<compile_context>
chip_gen: v5e
topology: v5e:2x2
jax: 0.10.0
libtpu: 0.0.40
codegen_flags: <defaults>
</compile_context>

<pallas_src>
import functools

import jax
import jax.numpy as jnp
from jax import lax
from jax.experimental import pallas as pl
from jax.experimental.pallas import tpu as pltpu


def _silu(v):
    # x * sigmoid(x), written with exp/div so kernel and reference share the exact formula
    return v / (1.0 + jnp.exp(-v))


def spp_kernel(x_ref, row_ref, w1_ref, b1_ref, w2_ref, b2_ref, o_ref, *, W):
    # x_ref:   (1, Cin, H*W)   activation, channels on sublane, spatial on lane (dense)
    # row_ref: (1, H*W)        int32 row index (h) of every lane
    # w1_ref:  (Chid, Cin)     conv1 weight with BN scale folded in;  b1_ref: (Chid, 1)
    # w2_ref:  (Cout, 4*Chid)  conv2 weight with BN scale folded in;  b2_ref: (Cout, 1)
    HW = x_ref.shape[2]
    x = x_ref[0]                                                       # (Cin, HW)

    # ---- conv1: 1x1 conv == channel matmul, folded BN bias, SiLU ----
    h = jnp.dot(w1_ref[...], x, preferred_element_type=jnp.float32) + b1_ref[...]
    h = _silu(h)                                                       # (Chid, HW)
    Chid = h.shape[0]

    # Row index of each lane, broadcast once to the activation shape.
    row = jnp.broadcast_to(row_ref[...], (Chid, HW))                   # (Chid, HW) int32

    # Roll amounts covering column displacements {+-1,+-2} and row displacements {+-1,+-2}.
    # Masks are derived by rolling the row map with the *same* call as the data, so they are
    # correct regardless of the roll direction convention and reject both image-edge and
    # wrap-around taps (PyTorch MaxPool2d uses implicit -inf padding -> OOB taps never win).
    w_amts = (1, 2, HW - 1, HW - 2)
    h_amts = (W, 2 * W, HW - W, HW - 2 * W)
    w_masks = [pltpu.roll(row, a, axis=1) == row for a in w_amts]      # same image row
    h_masks = []
    for a in h_amts:
        d = pltpu.roll(row, a, axis=1) - row
        h_masks.append((d <= 2) & (d >= -2))                           # |delta_row| <= 2, no wrap

    def pool5(v):
        # separable 5x5 max pool, stride 1, "same" output, registers only (XLU rolls + VPU max/select)
        r = v
        for a, m in zip(w_amts, w_masks):                              # along W
            t = pltpu.roll(v, a, axis=1)
            r = jnp.where(m, jnp.maximum(r, t), r)
        rw = r
        for a, m in zip(h_amts, h_masks):                              # along H
            t = pltpu.roll(rw, a, axis=1)
            r = jnp.where(m, jnp.maximum(r, t), r)
        return r

    p5 = pool5(h)          # kernel 5
    p9 = pool5(p5)         # kernel 9  (chained 5x5, exact)
    p13 = pool5(p9)        # kernel 13 (chained 5x5, exact)

    # channel concat == sublane concat (each piece is a multiple of 8 rows -> tile aligned)
    cat = jnp.concatenate([h, p5, p9, p13], axis=0)                    # (4*Chid, HW)

    # ---- conv2: 1x1 conv, folded BN bias, SiLU ----
    y = jnp.dot(w2_ref[...], cat, preferred_element_type=jnp.float32) + b2_ref[...]
    y = _silu(y)
    o_ref[0] = y.astype(o_ref.dtype)                                   # lane-dense (Cout, HW) store


def spp_bottleneck_pallas(x_nchw, P):
    N, Cin, H, W = x_nchw.shape
    assert H >= 5 and W >= 5, "roll-mask pooling assumes H, W >= 5"
    HW = H * W
    Chid = P["w1f"].shape[0]
    Cout = P["w2f"].shape[0]

    # NCHW -> (N, C, H*W): channels on sublane, dense H*W lane dim; plain reshape, no transpose.
    x = x_nchw.reshape(N, Cin, HW)
    row_map = (jnp.arange(HW, dtype=jnp.int32) // W).reshape(1, HW)

    grid_spec = pltpu.PrefetchScalarGridSpec(
        num_scalar_prefetch=0,
        grid=(N,),
        in_specs=[
            pl.BlockSpec((1, Cin, HW), lambda n: (n, 0, 0)),
            pl.BlockSpec((1, HW), lambda n: (0, 0)),
            pl.BlockSpec((Chid, Cin), lambda n: (0, 0)),
            pl.BlockSpec((Chid, 1), lambda n: (0, 0)),
            pl.BlockSpec((Cout, 4 * Chid), lambda n: (0, 0)),
            pl.BlockSpec((Cout, 1), lambda n: (0, 0)),
        ],
        out_specs=pl.BlockSpec((1, Cout, HW), lambda n: (n, 0, 0)),
    )
    cost = pl.CostEstimate(
        flops=2 * N * HW * (Cin * Chid + 4 * Chid * Cout) + 24 * N * Chid * HW,
        transcendentals=N * HW * (Chid + Cout),
        bytes_accessed=4 * (N * Cin * HW + N * Cout * HW + Chid * Cin + Cout * 4 * Chid),
    )
    # TODO(synk): for large H (e.g. 56x56 backbones / v7x 64 MiB VMEM) tile the grid over rows with a
    # 6-row halo instead of whole images per step; unnecessary at these small shapes.
    out = pl.pallas_call(
        functools.partial(spp_kernel, W=W),
        out_shape=jax.ShapeDtypeStruct((N, Cout, HW), x_nchw.dtype),
        grid_spec=grid_spec,
        compiler_params=pltpu.CompilerParams(dimension_semantics=("parallel",)),
        cost_estimate=cost,
    )(x, row_map, P["w1f"], P["b1"], P["w2f"], P["b2"])
    return out.reshape(N, Cout, H, W)


def fold_bn(w, gamma, beta, mean, var, eps=1e-5):
    # eval-mode BN folded into the (bias-free) conv: scale into weight rows, bias kept separate
    s = gamma / jnp.sqrt(var + eps)
    return w * s[:, None], (beta - mean * s)[:, None]


def make_params(key, cin, cout):
    chid = cin // 2
    c2in = 4 * chid                      # hidden * (len(kernel_sizes) + 1)
    ks = jax.random.split(key, 10)
    f32 = jnp.float32
    w1 = 0.1 * jax.random.normal(ks[0], (chid, cin), f32)         # torch (chid, cin, 1, 1) -> (chid, cin)
    g1 = 1.0 + 0.1 * jax.random.normal(ks[1], (chid,), f32)
    be1 = 0.1 * jax.random.normal(ks[2], (chid,), f32)
    mu1 = 0.1 * jax.random.normal(ks[3], (chid,), f32)
    v1 = jnp.abs(jax.random.normal(ks[4], (chid,), f32)) + 0.5
    w2 = 0.1 * jax.random.normal(ks[5], (cout, c2in), f32)        # torch (cout, 4*chid, 1, 1) -> (cout, 4*chid)
    g2 = 1.0 + 0.1 * jax.random.normal(ks[6], (cout,), f32)
    be2 = 0.1 * jax.random.normal(ks[7], (cout,), f32)
    mu2 = 0.1 * jax.random.normal(ks[8], (cout,), f32)
    v2 = jnp.abs(jax.random.normal(ks[9], (cout,), f32)) + 0.5
    w1f, b1 = fold_bn(w1, g1, be1, mu1, v1)
    w2f, b2 = fold_bn(w2, g2, be2, mu2, v2)
    return dict(w1f=w1f, b1=b1, w2f=w2f, b2=b2)


def _max_pool_same(x_nchw, ks):
    # PyTorch MaxPool2d(kernel_size=ks, stride=1, padding=ks//2): implicit -inf padding
    return lax.reduce_window(x_nchw, -jnp.inf, lax.max,
                             window_dimensions=(1, 1, ks, ks),
                             window_strides=(1, 1, 1, 1),
                             padding="SAME")


def reference_nchw(x, P, kernel_sizes=(5, 9, 13)):
    """Pure-JAX reference of SPPBottleneck (same folded-BN math, NCHW)."""
    h = jnp.einsum("oc,nchw->nohw", P["w1f"], x) + P["b1"][None, :, :, None]
    h = _silu(h)
    cat = jnp.concatenate([h] + [_max_pool_same(h, k) for k in kernel_sizes], axis=1)
    y = jnp.einsum("oc,nchw->nohw", P["w2f"], cat) + P["b2"][None, :, :, None]
    return _silu(y)


if __name__ == "__main__":
    key = jax.random.PRNGKey(0)
    kx, kp = jax.random.split(key)

    # SPPBottleneck(in_channels=32, out_channels=32): hidden = 16, conv2 in = 64
    N, Cin, H, W = 2, 32, 16, 16
    Cout = 32

    x_nchw = jax.random.normal(kx, (N, Cin, H, W), jnp.float32)
    params = make_params(kp, Cin, Cout)

    out = spp_bottleneck_pallas(x_nchw, params)
    jax.block_until_ready(out)

    ref = reference_nchw(x_nchw, params)
    assert out.shape == (N, Cout, H, W)
    assert jnp.allclose(out, ref, rtol=1e-3, atol=1e-3), "mismatch vs reference"

    print("KERNEL_OK")
</pallas_src>

<mosaic_0001>
module attributes {stable_mosaic.version = 11 : i64} {
  func.func @spp_kernel(%arg0: i32, %arg1: memref<1x32x256xf32, #tpu.memory_space<vmem>>, %arg2: memref<1x256xi32, #tpu.memory_space<vmem>>, %arg3: memref<16x32xf32, #tpu.memory_space<vmem>>, %arg4: memref<16x1xf32, #tpu.memory_space<vmem>>, %arg5: memref<32x64xf32, #tpu.memory_space<vmem>>, %arg6: memref<32x1xf32, #tpu.memory_space<vmem>>, %arg7: memref<1x32x256xf32, #tpu.memory_space<vmem>>) attributes {dimension_semantics = [#tpu.dimension_semantics<parallel>], iteration_bounds = array<i64: 2>, scalar_prefetch = 0 : i64, scratch_operands = 0 : i64, tpu.core_type = #tpu.core_type<tc>, window_params = [{transform_indices = @transform_0, window_bounds = array<i64: 1, 32, 256>}, {pipeline_mode = #tpu.pipeline_mode<synchronous>, transform_indices = @transform_1, window_bounds = array<i64: 1, 256>}, {pipeline_mode = #tpu.pipeline_mode<synchronous>, transform_indices = @transform_2, window_bounds = array<i64: 16, 32>}, {pipeline_mode = #tpu.pipeline_mode<synchronous>, transform_indices = @transform_3, window_bounds = array<i64: 16, 1>}, {pipeline_mode = #tpu.pipeline_mode<synchronous>, transform_indices = @transform_4, window_bounds = array<i64: 32, 64>}, {pipeline_mode = #tpu.pipeline_mode<synchronous>, transform_indices = @transform_5, window_bounds = array<i64: 32, 1>}, {transform_indices = @transform_6, window_bounds = array<i64: 1, 32, 256>}]} {
    %c0 = arith.constant 0 : index
    %c0_0 = arith.constant 0 : index
    %c0_1 = arith.constant 0 : index
    %0 = vector.load %arg1[%c0, %c0_0, %c0_1] : memref<1x32x256xf32, #tpu.memory_space<vmem>>, vector<1x32x256xf32>
    %1 = vector.shape_cast %0 : vector<1x32x256xf32> to vector<32x256xf32>
    %c0_2 = arith.constant 0 : index
    %c0_3 = arith.constant 0 : index
    %2 = vector.load %arg3[%c0_2, %c0_3] : memref<16x32xf32, #tpu.memory_space<vmem>>, vector<16x32xf32>
    %cst = arith.constant dense<0.000000e+00> : vector<16x256xf32>
    %3 = tpu.matmul %2, %1, %cst {dimension_numbers = #tpu.dot_dimension_numbers<[1], [0], [0], [1], [0, 0, 1, 1], [], []>} : vector<16x32xf32>, vector<32x256xf32>, vector<16x256xf32> -> vector<16x256xf32>
    %c0_4 = arith.constant 0 : index
    %c0_5 = arith.constant 0 : index
    %4 = vector.load %arg4[%c0_4, %c0_5] : memref<16x1xf32, #tpu.memory_space<vmem>>, vector<16x1xf32>
    %5 = vector.broadcast %4 : vector<16x1xf32> to vector<16x256xf32>
    %6 = arith.addf %3, %5 : vector<16x256xf32>
    %cst_6 = arith.constant 0.000000e+00 : f32
    %7 = vector.broadcast %cst_6 : f32 to vector<16x256xf32>
    %8 = arith.subf %7, %6 : vector<16x256xf32>
    %9 = math.exp %8 : vector<16x256xf32>
    %cst_7 = arith.constant 1.000000e+00 : f32
    %10 = vector.broadcast %cst_7 : f32 to vector<16x256xf32>
    %11 = arith.addf %10, %9 : vector<16x256xf32>
    %12 = arith.divf %6, %11 : vector<16x256xf32>
    %c0_8 = arith.constant 0 : index
    %c0_9 = arith.constant 0 : index
    %13 = vector.load %arg2[%c0_8, %c0_9] : memref<1x256xi32, #tpu.memory_space<vmem>>, vector<1x256xi32>
    %14 = vector.shape_cast %13 : vector<1x256xi32> to vector<1x256xi32>
    %15 = vector.broadcast %14 : vector<1x256xi32> to vector<16x256xi32>
    %c1_i32 = arith.constant 1 : i32
    %16 = tpu.dynamic_rotate %15 by %c1_i32 dim 1 : vector<16x256xi32>, i32 -> vector<16x256xi32>
    %17 = arith.cmpi eq, %16, %15 : vector<16x256xi32>
    %c2_i32 = arith.constant 2 : i32
    %18 = tpu.dynamic_rotate %15 by %c2_i32 dim 1 : vector<16x256xi32>, i32 -> vector<16x256xi32>
    %19 = arith.cmpi eq, %18, %15 : vector<16x256xi32>
    %c255_i32 = arith.constant 255 : i32
    %20 = tpu.dynamic_rotate %15 by %c255_i32 dim 1 : vector<16x256xi32>, i32 -> vector<16x256xi32>
    %21 = arith.cmpi eq, %20, %15 : vector<16x256xi32>
    %c254_i32 = arith.constant 254 : i32
    %22 = tpu.dynamic_rotate %15 by %c254_i32 dim 1 : vector<16x256xi32>, i32 -> vector<16x256xi32>
    %23 = arith.cmpi eq, %22, %15 : vector<16x256xi32>
    %c16_i32 = arith.constant 16 : i32
    %24 = tpu.dynamic_rotate %15 by %c16_i32 dim 1 : vector<16x256xi32>, i32 -> vector<16x256xi32>
    %25 = arith.subi %24, %15 : vector<16x256xi32>
    %c2_i32_10 = arith.constant 2 : i32
    %26 = vector.broadcast %c2_i32_10 : i32 to vector<16x256xi32>
    %27 = arith.cmpi sle, %25, %26 : vector<16x256xi32>
    %c-2_i32 = arith.constant -2 : i32
    %28 = vector.broadcast %c-2_i32 : i32 to vector<16x256xi32>
    %29 = arith.cmpi sge, %25, %28 : vector<16x256xi32>
    %30 = arith.andi %27, %29 : vector<16x256xi1>
    %c32_i32 = arith.constant 32 : i32
    %31 = tpu.dynamic_rotate %15 by %c32_i32 dim 1 : vector<16x256xi32>, i32 -> vector<16x256xi32>
    %32 = arith.subi %31, %15 : vector<16x256xi32>
    %c2_i32_11 = arith.constant 2 : i32
    %33 = vector.broadcast %c2_i32_11 : i32 to vector<16x256xi32>
    %34 = arith.cmpi sle, %32, %33 : vector<16x256xi32>
    %c-2_i32_12 = arith.constant -2 : i32
    %35 = vector.broadcast %c-2_i32_12 : i32 to vector<16x256xi32>
    %36 = arith.cmpi sge, %32, %35 : vector<16x256xi32>
    %37 = arith.andi %34, %36 : vector<16x256xi1>
    %c240_i32 = arith.constant 240 : i32
    %38 = tpu.dynamic_rotate %15 by %c240_i32 dim 1 : vector<16x256xi32>, i32 -> vector<16x256xi32>
    %39 = arith.subi %38, %15 : vector<16x256xi32>
    %c2_i32_13 = arith.constant 2 : i32
    %40 = vector.broadcast %c2_i32_13 : i32 to vector<16x256xi32>
    %41 = arith.cmpi sle, %39, %40 : vector<16x256xi32>
    %c-2_i32_14 = arith.constant -2 : i32
    %42 = vector.broadcast %c-2_i32_14 : i32 to vector<16x256xi32>
    %43 = arith.cmpi sge, %39, %42 : vector<16x256xi32>
    %44 = arith.andi %41, %43 : vector<16x256xi1>
    %c224_i32 = arith.constant 224 : i32
    %45 = tpu.dynamic_rotate %15 by %c224_i32 dim 1 : vector<16x256xi32>, i32 -> vector<16x256xi32>
    %46 = arith.subi %45, %15 : vector<16x256xi32>
    %c2_i32_15 = arith.constant 2 : i32
    %47 = vector.broadcast %c2_i32_15 : i32 to vector<16x256xi32>
    %48 = arith.cmpi sle, %46, %47 : vector<16x256xi32>
    %c-2_i32_16 = arith.constant -2 : i32
    %49 = vector.broadcast %c-2_i32_16 : i32 to vector<16x256xi32>
    %50 = arith.cmpi sge, %46, %49 : vector<16x256xi32>
    %51 = arith.andi %48, %50 : vector<16x256xi1>
    %c1_i32_17 = arith.constant 1 : i32
    %52 = tpu.dynamic_rotate %12 by %c1_i32_17 dim 1 : vector<16x256xf32>, i32 -> vector<16x256xf32>
    %53 = arith.maximumf %12, %52 : vector<16x256xf32>
    %54 = arith.select %17, %53, %12 : vector<16x256xi1>, vector<16x256xf32>
    %c2_i32_18 = arith.constant 2 : i32
    %55 = tpu.dynamic_rotate %12 by %c2_i32_18 dim 1 : vector<16x256xf32>, i32 -> vector<16x256xf32>
    %56 = arith.maximumf %54, %55 : vector<16x256xf32>
    %57 = arith.select %19, %56, %54 : vector<16x256xi1>, vector<16x256xf32>
    %c255_i32_19 = arith.constant 255 : i32
    %58 = tpu.dynamic_rotate %12 by %c255_i32_19 dim 1 : vector<16x256xf32>, i32 -> vector<16x256xf32>
    %59 = arith.maximumf %57, %58 : vector<16x256xf32>
    %60 = arith.select %21, %59, %57 : vector<16x256xi1>, vector<16x256xf32>
    %c254_i32_20 = arith.constant 254 : i32
    %61 = tpu.dynamic_rotate %12 by %c254_i32_20 dim 1 : vector<16x256xf32>, i32 -> vector<16x256xf32>
    %62 = arith.maximumf %60, %61 : vector<16x256xf32>
    %63 = arith.select %23, %62, %60 : vector<16x256xi1>, vector<16x256xf32>
    %c16_i32_21 = arith.constant 16 : i32
    %64 = tpu.dynamic_rotate %63 by %c16_i32_21 dim 1 : vector<16x256xf32>, i32 -> vector<16x256xf32>
    %65 = arith.maximumf %63, %64 : vector<16x256xf32>
    %66 = arith.select %30, %65, %63 : vector<16x256xi1>, vector<16x256xf32>
    %c32_i32_22 = arith.constant 32 : i32
    %67 = tpu.dynamic_rotate %63 by %c32_i32_22 dim 1 : vector<16x256xf32>, i32 -> vector<16x256xf32>
    %68 = arith.maximumf %66, %67 : vector<16x256xf32>
    %69 = arith.select %37, %68, %66 : vector<16x256xi1>, vector<16x256xf32>
    %c240_i32_23 = arith.constant 240 : i32
    %70 = tpu.dynamic_rotate %63 by %c240_i32_23 dim 1 : vector<16x256xf32>, i32 -> vector<16x256xf32>
    %71 = arith.maximumf %69, %70 : vector<16x256xf32>
    %72 = arith.select %44, %71, %69 : vector<16x256xi1>, vector<16x256xf32>
    %c224_i32_24 = arith.constant 224 : i32
    %73 = tpu.dynamic_rotate %63 by %c224_i32_24 dim 1 : vector<16x256xf32>, i32 -> vector<16x256xf32>
    %74 = arith.maximumf %72, %73 : vector<16x256xf32>
    %75 = arith.select %51, %74, %72 : vector<16x256xi1>, vector<16x256xf32>
    %c1_i32_25 = arith.constant 1 : i32
    %76 = tpu.dynamic_rotate %75 by %c1_i32_25 dim 1 : vector<16x256xf32>, i32 -> vector<16x256xf32>
    %77 = arith.maximumf %75, %76 : vector<16x256xf32>
    %78 = arith.select %17, %77, %75 : vector<16x256xi1>, vector<16x256xf32>
    %c2_i32_26 = arith.constant 2 : i32
    %79 = tpu.dynamic_rotate %75 by %c2_i32_26 dim 1 : vector<16x256xf32>, i32 -> vector<16x256xf32>
    %80 = arith.maximumf %78, %79 : vector<16x256xf32>
    %81 = arith.select %19, %80, %78 : vector<16x256xi1>, vector<16x256xf32>
    %c255_i32_27 = arith.constant 255 : i32
    %82 = tpu.dynamic_rotate %75 by %c255_i32_27 dim 1 : vector<16x256xf32>, i32 -> vector<16x256xf32>
    %83 = arith.maximumf %81, %82 : vector<16x256xf32>
    %84 = arith.select %21, %83, %81 : vector<16x256xi1>, vector<16x256xf32>
    %c254_i32_28 = arith.constant 254 : i32
    %85 = tpu.dynamic_rotate %75 by %c254_i32_28 dim 1 : vector<16x256xf32>, i32 -> vector<16x256xf32>
    %86 = arith.maximumf %84, %85 : vector<16x256xf32>
    %87 = arith.select %23, %86, %84 : vector<16x256xi1>, vector<16x256xf32>
    %c16_i32_29 = arith.constant 16 : i32
    %88 = tpu.dynamic_rotate %87 by %c16_i32_29 dim 1 : vector<16x256xf32>, i32 -> vector<16x256xf32>
    %89 = arith.maximumf %87, %88 : vector<16x256xf32>
    %90 = arith.select %30, %89, %87 : vector<16x256xi1>, vector<16x256xf32>
    %c32_i32_30 = arith.constant 32 : i32
    %91 = tpu.dynamic_rotate %87 by %c32_i32_30 dim 1 : vector<16x256xf32>, i32 -> vector<16x256xf32>
    %92 = arith.maximumf %90, %91 : vector<16x256xf32>
    %93 = arith.select %37, %92, %90 : vector<16x256xi1>, vector<16x256xf32>
    %c240_i32_31 = arith.constant 240 : i32
    %94 = tpu.dynamic_rotate %87 by %c240_i32_31 dim 1 : vector<16x256xf32>, i32 -> vector<16x256xf32>
    %95 = arith.maximumf %93, %94 : vector<16x256xf32>
    %96 = arith.select %44, %95, %93 : vector<16x256xi1>, vector<16x256xf32>
    %c224_i32_32 = arith.constant 224 : i32
    %97 = tpu.dynamic_rotate %87 by %c224_i32_32 dim 1 : vector<16x256xf32>, i32 -> vector<16x256xf32>
    %98 = arith.maximumf %96, %97 : vector<16x256xf32>
    %99 = arith.select %51, %98, %96 : vector<16x256xi1>, vector<16x256xf32>
    %c1_i32_33 = arith.constant 1 : i32
    %100 = tpu.dynamic_rotate %99 by %c1_i32_33 dim 1 : vector<16x256xf32>, i32 -> vector<16x256xf32>
    %101 = arith.maximumf %99, %100 : vector<16x256xf32>
    %102 = arith.select %17, %101, %99 : vector<16x256xi1>, vector<16x256xf32>
    %c2_i32_34 = arith.constant 2 : i32
    %103 = tpu.dynamic_rotate %99 by %c2_i32_34 dim 1 : vector<16x256xf32>, i32 -> vector<16x256xf32>
    %104 = arith.maximumf %102, %103 : vector<16x256xf32>
    %105 = arith.select %19, %104, %102 : vector<16x256xi1>, vector<16x256xf32>
    %c255_i32_35 = arith.constant 255 : i32
    %106 = tpu.dynamic_rotate %99 by %c255_i32_35 dim 1 : vector<16x256xf32>, i32 -> vector<16x256xf32>
    %107 = arith.maximumf %105, %106 : vector<16x256xf32>
    %108 = arith.select %21, %107, %105 : vector<16x256xi1>, vector<16x256xf32>
    %c254_i32_36 = arith.constant 254 : i32
    %109 = tpu.dynamic_rotate %99 by %c254_i32_36 dim 1 : vector<16x256xf32>, i32 -> vector<16x256xf32>
    %110 = arith.maximumf %108, %109 : vector<16x256xf32>
    %111 = arith.select %23, %110, %108 : vector<16x256xi1>, vector<16x256xf32>
    %c16_i32_37 = arith.constant 16 : i32
    %112 = tpu.dynamic_rotate %111 by %c16_i32_37 dim 1 : vector<16x256xf32>, i32 -> vector<16x256xf32>
    %113 = arith.maximumf %111, %112 : vector<16x256xf32>
    %114 = arith.select %30, %113, %111 : vector<16x256xi1>, vector<16x256xf32>
    %c32_i32_38 = arith.constant 32 : i32
    %115 = tpu.dynamic_rotate %111 by %c32_i32_38 dim 1 : vector<16x256xf32>, i32 -> vector<16x256xf32>
    %116 = arith.maximumf %114, %115 : vector<16x256xf32>
    %117 = arith.select %37, %116, %114 : vector<16x256xi1>, vector<16x256xf32>
    %c240_i32_39 = arith.constant 240 : i32
    %118 = tpu.dynamic_rotate %111 by %c240_i32_39 dim 1 : vector<16x256xf32>, i32 -> vector<16x256xf32>
    %119 = arith.maximumf %117, %118 : vector<16x256xf32>
    %120 = arith.select %44, %119, %117 : vector<16x256xi1>, vector<16x256xf32>
    %c224_i32_40 = arith.constant 224 : i32
    %121 = tpu.dynamic_rotate %111 by %c224_i32_40 dim 1 : vector<16x256xf32>, i32 -> vector<16x256xf32>
    %122 = arith.maximumf %120, %121 : vector<16x256xf32>
    %123 = arith.select %51, %122, %120 : vector<16x256xi1>, vector<16x256xf32>
    %124 = tpu.concatenate %12, %75, %99, %123 in 0 : vector<16x256xf32>, vector<16x256xf32>, vector<16x256xf32>, vector<16x256xf32> -> vector<64x256xf32>
    %c0_41 = arith.constant 0 : index
    %c0_42 = arith.constant 0 : index
    %125 = vector.load %arg5[%c0_41, %c0_42] : memref<32x64xf32, #tpu.memory_space<vmem>>, vector<32x64xf32>
    %cst_43 = arith.constant dense<0.000000e+00> : vector<32x256xf32>
    %126 = tpu.matmul %125, %124, %cst_43 {dimension_numbers = #tpu.dot_dimension_numbers<[1], [0], [0], [1], [0, 0, 1, 1], [], []>} : vector<32x64xf32>, vector<64x256xf32>, vector<32x256xf32> -> vector<32x256xf32>
    %c0_44 = arith.constant 0 : index
    %c0_45 = arith.constant 0 : index
    %127 = vector.load %arg6[%c0_44, %c0_45] : memref<32x1xf32, #tpu.memory_space<vmem>>, vector<32x1xf32>
    %128 = vector.broadcast %127 : vector<32x1xf32> to vector<32x256xf32>
    %129 = arith.addf %126, %128 : vector<32x256xf32>
    %cst_46 = arith.constant 0.000000e+00 : f32
    %130 = vector.broadcast %cst_46 : f32 to vector<32x256xf32>
    %131 = arith.subf %130, %129 : vector<32x256xf32>
    %132 = math.exp %131 : vector<32x256xf32>
    %cst_47 = arith.constant 1.000000e+00 : f32
    %133 = vector.broadcast %cst_47 : f32 to vector<32x256xf32>
    %134 = arith.addf %133, %132 : vector<32x256xf32>
    %135 = arith.divf %129, %134 : vector<32x256xf32>
    %c0_48 = arith.constant 0 : index
    %c0_49 = arith.constant 0 : index
    %c0_50 = arith.constant 0 : index
    %136 = vector.load %arg7[%c0_48, %c0_49, %c0_50] : memref<1x32x256xf32, #tpu.memory_space<vmem>>, vector<1x32x256xf32>
    %137 = vector.shape_cast %136 : vector<1x32x256xf32> to vector<32x256xf32>
    %138 = vector.shape_cast %135 : vector<32x256xf32> to vector<1x32x256xf32>
    tpu.vector_store %arg7[%c0_48, %c0_49, %c0_50], %138 {strides = array<i32>} : memref<1x32x256xf32, #tpu.memory_space<vmem>>, vector<1x32x256xf32>,
    return
  }
  func.func @transform_0(%arg0: i32) -> (i32, i32, i32) {
    %c0_i32 = arith.constant 0 : i32
    %c0_i32_0 = arith.constant 0 : i32
    %c0_i32_1 = arith.constant 0 : i32
    return %arg0, %c0_i32, %c0_i32_0 : i32, i32, i32
  }
  func.func @transform_1(%arg0: i32) -> (i32, i32) {
    %c0_i32 = arith.constant 0 : i32
    %c0_i32_0 = arith.constant 0 : i32
    %c0_i32_1 = arith.constant 0 : i32
    return %c0_i32, %c0_i32_0 : i32, i32
  }
  func.func @transform_2(%arg0: i32) -> (i32, i32) {
    %c0_i32 = arith.constant 0 : i32
    %c0_i32_0 = arith.constant 0 : i32
    %c0_i32_1 = arith.constant 0 : i32
    return %c0_i32, %c0_i32_0 : i32, i32
  }
  func.func @transform_3(%arg0: i32) -> (i32, i32) {
    %c0_i32 = arith.constant 0 : i32
    %c0_i32_0 = arith.constant 0 : i32
    %c0_i32_1 = arith.constant 0 : i32
    return %c0_i32, %c0_i32_0 : i32, i32
  }
  func.func @transform_4(%arg0: i32) -> (i32, i32) {
    %c0_i32 = arith.constant 0 : i32
    %c0_i32_0 = arith.constant 0 : i32
    %c0_i32_1 = arith.constant 0 : i32
    return %c0_i32, %c0_i32_0 : i32, i32
  }
  func.func @transform_5(%arg0: i32) -> (i32, i32) {
    %c0_i32 = arith.constant 0 : i32
    %c0_i32_0 = arith.constant 0 : i32
    %c0_i32_1 = arith.constant 0 : i32
    return %c0_i32, %c0_i32_0 : i32, i32
  }
  func.func @transform_6(%arg0: i32) -> (i32, i32, i32) {
    %c0_i32 = arith.constant 0 : i32
    %c0_i32_0 = arith.constant 0 : i32
    %c0_i32_1 = arith.constant 0 : i32
    return %arg0, %c0_i32, %c0_i32_0 : i32, i32, i32
  }
}

</mosaic_0001>

<bundles_post_ra>
// kernel: tpu_custom_call.1
= control target key start
LH: loop header
LB: loop body
LE: loop exit
PB: predicated region body
PF: predicated region fallthrough
CT: control target
= control target key end

     0   :  { %11 = vsyncpa [#allocation3], 0  ;;  %s2879_s0 = inlined_call_operand.hbm [shape: f32[2,32,256], index: 0, kind: input, shape index: {}]   ;;  %s2880_s1 = inlined_call_operand.vmem [shape: s32[1,256], index: 1, kind: input, shape index: {}]   ;;  %s2881_s2 = inlined_call_operand.vmem [shape: f32[16,32], index: 2, kind: input, shape index: {}]   ;;  %s2882_s3 = inlined_call_operand.vmem [shape: f32[16,1], index: 3, kind: input, shape index: {}]   ;;  %s2883_s4 = inlined_call_operand.vmem [shape: f32[32,64], index: 4, kind: input, shape index: {}]   ;;  %s2884_s5 = inlined_call_operand.vmem [shape: f32[32,1], index: 5, kind: input, shape index: {}]   ;;  %s2885_s6 = inlined_call_operand.hbm [shape: f32[2,32,256], index: 6, kind: output, shape index: {}]  }
   0x1   :  { %13 = vsyncpa [#allocation3 + $0x1], 0 }
   0x2   :  { %14 = vsyncpa [#allocation4], 0 }
   0x3   :  { %16 = vsyncpa [#allocation4 + $0x1], 0  ;;  %s1890_s21 = smov 0   ;;  %s1892_s22 = smov 0  }
   0x4   :  { %s1894_s23 = smov 0   ;;  %s1896_s24 = smov 0  }
   0x5 LB: > { %s1911_s25 = sadd.s32 4294967295, %s1841_s24   ;;  %s1352_s26 = sadd.s32 4294967294, %s1841_s24   ;;  %s1841_s24 = sphi %s1896_s24, %s3046_s24   ;;  %s1837_s23 = sphi %s1894_s23, %s3045_s23   ;;  %s1833_s22 = sphi %s1892_s22, %s3044_s22   ;;  %s1829_s21 = sphi %s1890_s21, %s3043_s21  }
   0x6   : > { %s1915_s27 = sadd.s32 1, %s1841_s24   ;;  %s29_s28 = sadd.s32 1, %s1837_s23 }
   0x7   : > { %s26_s29 = ssub.s32 %s1841_s24, %s1915_s27  ;;  %p36_p0 = scmp.ne.s32.totalorder %s1837_s23, %s1833_s22 }
   0x8   : > { %p27_p1 = scmp.eq.s32.totalorder %s26_s29, 0  ;;  %p37_p2 = scmp.eq.s32.totalorder %s1841_s24, 0 }
   0x9   : > { %p42_p3 = scmp.ne.s32.totalorder %s1833_s22, %s1829_s21  ;;  %p43_p4 = scmp.eq.s32.totalorder %s1911_s25, 0 }
   0xa   : > { %s1927_s30 = scalar_select %p27_p1, %s1837_s23, %s29_s28  }
   0xb   : > { %p1929_p5 = por %p37_p2, %p36_p0  ;;  %p1933_p6 = por %p43_p4, %p42_p3 }
   0xc   : > { %p171_p7 = scmp.eq.s32.totalorder %s1911_s25, 1  ;;  %p177_p8 = scmp.eq.s32.totalorder %s1352_s26, 1 }
   0xd   : > { %p1408_p10 = scmp.lt.s32.totalorder %s1841_s24, 2  ;;  %s212_s11 = sand.u32 1, %s1837_s23  }
   0xe   : > { %p1940_p11 = por %p171_p7, %p36_p0  ;;  %p1944_p12 = por %p177_p8, %p42_p3 }
   0xf   : > { %s1378_s12 = sshll.u32 %s1841_s24, 6  ;;  %s1355_s13 = sshll.u32 %s212_s11, 6 }
  0x10   : > { %s221_s16 = scalar_lea.hbm %s2879_s0, %s1378_s12  ;;  %s216_s18 = scalar_lea.vmem [#allocation2], %s1355_s13 }
  0x11   : > { %s222_s17 = sshll.u32 %s221_s16, 4  ;;  %s224_s19 = sshll.u32 %s216_s18, 4  ;;  %s223_s17 = int_to_ptr.hbm [resolvable:$true] %s222_s17  ;;  %s225_s19 = int_to_ptr.vmem [resolvable:$true] %s224_s19 }
  0x12   : > { %p1955_p13 = pnand %p1408_p10, %p1929_p5  ;;  %p1358_p0 = scmp.ge.s32.totalorder %s1841_s24, 1 }
  0x13   : > { %p232_p1 = scmp.lt.s32.totalorder %s1841_s24, 3  ;;  %s213_s26 = scalar_lea.sflag [#allocation3], %s212_s11 }
  0x14   : > { %s1745_s28 = sshra.s32 %s223_s17, 4  ;;  %p1749_p3 = pneg %p1955_p13  ;;  %s1746_s28 = int_to_ptr.hbm [resolvable:$true] %s1745_s28 }
  0x15   : > { %s1747_s29 = scalar_lea.hbm %s1746_s28, 64  ;;  %s1752_s7 = scalar_lea.hbm %s2879_s0, 128 }
  0x16   : > { %p1748_p2 = scmp.ne.s32.totalorder %s1746_s28, %s1747_s29  ;;  %p1753_p5 = scmp.lt.s32.totalorder %s1746_s28, %s2879_s0 }
  0x17   : > { %p1754_p8 = scmp.lt.s32.totalorder %s1752_s7, %s1747_s29 }
  0x18   : > { %p1750_p4 = pnand %p1749_p3, %p1748_p2 }
  0x19   : > { %p1755_p10 = por %p1754_p8, %p1753_p5 }
  0x1a   : > { %p1751_p7 = pneg %p1750_p4 }
  0x1c   : > { %p1756_p9 = pnand %p1755_p10, %p1751_p7 }
  0x1e   : > { %1759 = shalt.err (!%p1756_p9)
}
  0x1f   : > { %s1843_s11 = smov 256   ;;  %s1844_s16 = smov 16  }
  0x20   : > { %1403 = dma.hbm_to_vmem [thread:$0]  (!%p1955_p13), %s223_s17, 1024, %s225_s19, %s213_s26, %s1843_s11, %s1843_s11, %s1844_s16  }
  0x21   : > { %p233_p2 = pnand %p1358_p0, %p232_p1 }
  0x22   : > { %s1976_s18 = sand.u32 (!%p233_p2), 1, %s1833_s22  }
  0x23   : > { %236 = sbr.rel (%p233_p2) target bundleno = 1259 (0x4eb), region = 44  ;;  %s1359_s28 = sshll.u32 (!%p233_p2), %s1976_s18, 6 }
  0x24   : > { %s239_s29 = scalar_lea.sflag (!%p233_p2), [#allocation3], %s1976_s18  ;;  %s242_s12 = scalar_lea.vmem (!%p233_p2), [#allocation2], %s1359_s28 }
  0x28   : > { %1820 = dma.done.wait (%p1933_p6), %s239_s29, 1024  }
  0x29   : > { %1822 = vsyncadd (%p1933_p6), %s239_s29, 4294966272  ;;  %v1845_v0 = vmov 0   ;;  %v278_v1 = vld [vmem:[%s242_s12 + $0x30] sm:$0xff]  ;;  %v279_v2 = vld [vmem:[%s242_s12 + $0x38] sm:$0xff]  ;;  %vm294_vm0 = vcmask 261120   ;;  %s1846_s16 = smov 1  }
  0x2a   : > { %1454 = vset.pattern.permute.xlu0 %v1845_v0  ;;  %1695 = vset.pattern.permute.xlu1 %v1845_v0  ;;  %v283_v3 = vld [vmem:[%s2882_s3 + $0x8] sm:$0xff]  ;;  %v276_v4 = vld [vmem:[%s242_s12 + $0x20] sm:$0xff]  ;;  %v274_v6 = vld [vmem:[%s242_s12 + $0x10] sm:$0xff]  ;;  %s1847_s29 = smov 127   ;;  %s1849_s17 = smov 126  }
  0x2b   : > { %1696 = vset.pattern.permute.xlu2 %v1845_v0  ;;  %313 = vmatpush.msra.mxu0 %v278_v1  ;;  %v277_v5 = vld [vmem:[%s242_s12 + $0x28] sm:$0xff]  ;;  %v275_v7 = vld [vmem:[%s242_s12 + $0x18] sm:$0xff]  ;;  %v272_v8 = vld [vmem:[%s242_s12] sm:$0xff]  ;;  %s1850_s19 = smov 16   ;;  %s1851_s8 = smov 112  }
  0x2c   : > { %336 = vmatpush.msra.mxu1 %v279_v2  ;;  %291 = vperm.xlu0 %1454, %v283_v3   ;;  %v273_v9 = vld [vmem:[%s242_s12 + $0x8] sm:$0xff]  ;;  %v280_v10 = vld [vmem:[%s2881_s2] sm:$0xff]  ;;  %s1848_s12 = smov 2   ;;  %s1852_s20 = smov 32  }
  0x2d   : > { %314 = vmatpush.msra.mxu0 %v276_v4  ;;  %v282_v11 = vld [vmem:[%s2882_s3] sm:$0xff]  ;;  %v281_v12 = vld [vmem:[%s2881_s2 + $0x8] sm:$0xff]  ;;  %s1853_s26 = smov 96   ;;  %s2824_s11 = scalar_lea.vmem [#allocation5], %s1359_s28 }
  0x2e   : > { %337 = vmatpush.msra.mxu1 %v277_v5  ;;  %v423_v13 = vld [vmem:[%s2880_s1] sm:$0x3]  ;;  %s1379_s28 = sshll.u32 %s1911_s25, 6  ;;  %s1276_s25 = sshll.u32 %s2824_s11, 4  ;;  %s1277_s25 = int_to_ptr.vmem [resolvable:$true] %s1276_s25 }
  0x2f   : > { %315 = vmatpush.msra.mxu0 %v274_v6  ;;  %v2001_v14 = vperm.slane %v423_v13, 1  ;;  %v2007_v15 = vperm.slane %v423_v13, 0  ;;  %s1795_s14 = scalar_lea.hbm %s2885_s6, 128 }
  0x30   : > { %338 = vmatpush.msra.mxu1 %v275_v7 }
  0x31   : > { %316 = vmatpush.msra.mxu0 %v272_v8  ;;  %428 = vrot.lane.b32.xlu2 %v2001_v14, %s1846_s16 }
  0x32   : > { %339 = vmatpush.msra.mxu1 %v273_v9  ;;  %1361 = vmatmul.msk.f32.vlgmr.msra.gmra.mxu0 %vm294_vm0, %v280_v10 }
  0x33   : > { %1363 = vmatmul.msk.f32.vlgmr.msra.gmra.mxu1 %vm294_vm0, %v280_v10  ;;  %426 = vrot.lane.b32.xlu1 %v2007_v15, %s1846_s16 }
  0x34   : > { %286 = vperm.xlu0 %1454, %v282_v11  }
  0x39   : > { %439 = vrot.lane.b32.xlu2 %v2001_v14, %s1848_s12 }
  0x3a   : > { %1362 = vmatmul.msk.f32.gmra.mxu0 %vm294_vm0, %v281_v12 }
  0x3b   : > { %1364 = vmatmul.msk.f32.gmra.mxu1 %vm294_vm0, %v281_v12  ;;  %437 = vrot.lane.b32.xlu1 %v2007_v15, %s1848_s12 }
  0x3c   : > { %448 = vrot.lane.b32.xlu0 %v2001_v14, %s1847_s29 }
  0x41   : > { %446 = vrot.lane.b32.xlu2 %v2007_v15, %s1847_s29 }
  0x9e   : > { %v292_v16 = vpop.permute.xlu0 %291 }
  0xa6   : > { %v287_v17 = vpop.permute.xlu0 %286 }
  0xaf   : > { %v318_v18 = vpop.f32.mrf.mxu0 }
  0xb0   : > { %v341_v19 = vpop.f32.mrf.mxu1  ;;  %v319_v20 = vadd.f32 %v318_v18, %v287_v17 }
  0xb1   : > { %v2015_v21 = vadd.f32 %v341_v19, %v287_v17 }
  0xb2   : > { %v347_v22 = vsub.f32 0.0, %v319_v20 }
  0xb3   : > { %v348_v23 = vsub.f32 0.0, %v2015_v21 }
  0xb4   : > { %v351_v24 = vmul.f32 1.442695, %v347_v22 }
  0xb5   : > { %v353_v25 = vmul.f32 1.442695, %v348_v23 }
  0xb6   : > { %1697 = vpow2.f32 %v351_v24 }
  0xb7   : > { %1699 = vpow2.f32 %v353_v25  ;;  %v321_v26 = vpop.f32.mrf.mxu0 }
  0xb8   : > { %v344_v27 = vpop.f32.mrf.mxu1  ;;  %v2020_v28 = vadd.f32 %v321_v26, %v292_v16  ;;  %v429_v26 = vpop.permute.xlu2 %428 }
  0xb9   : > { %v2022_v29 = vadd.f32 %v344_v27, %v292_v16 }
  0xba   : > { %v349_v30 = vsub.f32 0.0, %v2020_v28 }
  0xbb   : > { %v350_v31 = vsub.f32 0.0, %v2022_v29 }
  0xbc   : > { %v1698_v32 = vpop.eup %1697  ;;  %v355_v33 = vmul.f32 1.442695, %v349_v30  ;;  %v449_v30 = vpop.permute.xlu0 %448 }
  0xbd   : > { %v1700_v34 = vpop.eup %1699  ;;  %v359_v35 = vadd.f32 1.0, %v1698_v32  ;;  %v357_v36 = vmul.f32 1.442695, %v350_v31  ;;  %v430_v31 = vlaneseq }
  0xbe   : > { %v360_v37 = vadd.f32 1.0, %v1700_v34  ;;  %1701 = vpow2.f32 %v355_v33 }
  0xbf   : > { %1703 = vrcp.f32 %v359_v35  ;;  %v372_v47 = vand.u32 2147483647, %v359_v35  ;;  %v374_v48 = vand.u32 2147483648, %v359_v35  ;;  %vm368_vm3 = vweird.f32 %v359_v35 }
  0xc0   : > { %1705 = vrcp.f32 %v360_v37  ;;  %v389_v51 = vand.u32 2147483648, %v360_v37  ;;  %v387_v53 = vand.u32 2147483647, %v360_v37  ;;  %vm383_vm5 = vweird.f32 %v360_v37  ;;  %v440_v27 = vpop.permute.xlu2 %439 }
  0xc1   : > { %1707 = vpow2.f32 %v357_v36  ;;  %v375_v56 = vor.u32 1.1754944e-38, %v374_v48  ;;  %vm373_vm6 = vcmp.eq.f32.partialorder %v372_v47, 8.507059e+37  ;;  %v2065_v33 = vand.u32 127, %v430_v31 }
  0xc2   : > { %v390_v59 = vor.u32 1.1754944e-38, %v389_v51  ;;  %vm388_vm8 = vcmp.eq.f32.partialorder %v387_v53, 8.507059e+37 }
  0xc4   : > { %v1702_v38 = vpop.eup %1701 }
  0xc5   : > { %v1704_v39 = vpop.eup %1703  ;;  %v361_v40 = vadd.f32 1.0, %v1702_v38 }
  0xc6   : > { %v1706_v41 = vpop.eup %1705  ;;  %v364_v42 = vmul.f32 %v1704_v39, %v359_v35  ;;  %vm369_vm1 = vweird.f32 %v1704_v39 }
  0xc7   : > { %v1708_v43 = vpop.eup %1707  ;;  %v379_v44 = vmul.f32 %v1706_v41, %v360_v37  ;;  %1709 = vrcp.f32 %v361_v40  ;;  %vm384_vm2 = vweird.f32 %v1706_v41  ;;  %vm370_vm4 = vmor %vm368_vm3, %vm369_vm1  ;;  %v404_v4 = vand.u32 2147483648, %v361_v40 }
  0xc8   : > { %v365_v45 = vsub.f32 1.0, %v364_v42  ;;  %v362_v46 = vadd.f32 1.0, %v1708_v43  ;;  %vm385_vm7 = vmor %vm383_vm5, %vm384_vm2  ;;  %v402_v7 = vand.u32 2147483647, %v361_v40  ;;  %vm398_vm10 = vweird.f32 %v361_v40 }
  0xc9   : > { %v380_v49 = vsub.f32 1.0, %v379_v44  ;;  %v405_v12 = vor.u32 1.1754944e-38, %v404_v4  ;;  %vm2889_vm1 = vcmp.lt.s32.totalorder %v2065_v33, 1  ;;  %vm2887_vm5 = vcmp.lt.s32.totalorder %v2065_v33, 127 }
  0xca   : > { %v366_v50 = vmul.f32 %v1704_v39, %v365_v45  ;;  %1711 = vrcp.f32 %v362_v46  ;;  %v419_v11 = vand.u32 2147483648, %v362_v46  ;;  %v417_v16 = vand.u32 2147483647, %v362_v46 }
  0xcb   : > { %v381_v52 = vmul.f32 %v1706_v41, %v380_v49  ;;  %vm403_vm13 = vcmp.eq.f32.partialorder %v402_v7, 8.507059e+37  ;;  %vm413_vm14 = vweird.f32 %v362_v46 }
  0xcc   : > { %v367_v54 = vadd.f32 %v1704_v39, %v366_v50  ;;  %vm418_vm0 = vcmp.eq.f32.partialorder %v417_v16, 8.507059e+37 }
  0xcd   : > { %v1710_v55 = vpop.eup %1709  ;;  %v382_v57 = vadd.f32 %v1706_v41, %v381_v52 }
  0xce   : > { %v371_v58 = vsel %vm370_vm4, %v1704_v39, %v367_v54  ;;  %v394_v60 = vmul.f32 %v1710_v55, %v361_v40  ;;  %vm399_vm9 = vweird.f32 %v1710_v55  ;;  %vm2888_vm4 = vcmp.lt.s32.totalorder %v2065_v33, 2 }
  0xcf   : > { %v376_v61 = vsel %vm373_vm6, %v375_v56, %v371_v58  ;;  %v386_v62 = vsel %vm385_vm7, %v1706_v41, %v382_v57  ;;  %vm400_vm11 = vmor %vm398_vm10, %vm399_vm9  ;;  %vm2886_vm10 = vcmp.lt.s32.totalorder %v2065_v33, 126 }
  0xd0   : > { %v1712_v63 = vpop.eup %1711  ;;  %v2026_v0 = vmul.f32 %v376_v61, %v319_v20  ;;  %v391_v1 = vsel %vm388_vm8, %v390_v59, %v386_v62  ;;  %v395_v2 = vsub.f32 1.0, %v394_v60  ;;  %v420_v20 = vor.u32 1.1754944e-38, %v419_v11 }
  0xd1   : > { %v2029_v3 = vmul.f32 %v391_v1, %v2015_v21  ;;  %v409_v5 = vmul.f32 %v1712_v63, %v362_v46  ;;  %vm414_vm12 = vweird.f32 %v1712_v63 }
  0xd2   : > { %v396_v6 = vmul.f32 %v1710_v55, %v395_v2  ;;  %vm415_vm15 = vmor %vm413_vm14, %vm414_vm12  ;;  %v2924_v2 = vmov 0  ;;  %vm2890_vm14 = vcmp.lt.s32.totalorder %v2065_v33, 112 }
  0xd3   : > { %v410_v8 = vsub.f32 1.0, %v409_v5  ;;  %v1465_v9 = vpack.i.bf16 %v2029_v3, %v2026_v0 }
  0xd4   : > { %v397_v10 = vadd.f32 %v1710_v55, %v396_v6 }
  0xd5   : > { %v411_v13 = vmul.f32 %v1712_v63, %v410_v8  ;;  %1466 = vrot.lane.b32.xlu1 %v1465_v9, %s1847_s29  ;;  %1461 = vrot.lane.b32.xlu0 %v1465_v9, %s1848_s12 }
  0xd6   : > { %v401_v17 = vsel %vm400_vm11, %v1710_v55, %v397_v10  ;;  %1456 = vrot.lane.b32.xlu2 %v1465_v9, %s1846_s16 }
  0xd7   : > { %v406_v18 = vsel %vm403_vm13, %v405_v12, %v401_v17  ;;  %v412_v19 = vadd.f32 %v1712_v63, %v411_v13  ;;  %vm2896_vm13 = vcmp.lt.s32.totalorder %v2065_v33, 16 }
  0xd8   : > { %v2037_v21 = vmul.f32 %v406_v18, %v2020_v28  ;;  %v427_v28 = vpop.permute.xlu1 %426 }
  0xd9   : > { %v416_v22 = vsel %vm415_vm15, %v1712_v63, %v412_v19  ;;  %v433_v41 = vsel %vm2889_vm1, %v427_v28, %v429_v26  ;;  %v434_v42 = vsel %vm2889_vm1, %v429_v26, %v427_v28  ;;  %vm2891_vm15 = vcmp.lt.s32.totalorder %v2065_v33, 32 }
  0xda   : > { %v421_v23 = vsel %vm418_vm0, %v420_v20, %v416_v22  ;;  %vm2079_vm2 = vcmp.eq.s32.totalorder %v434_v42, %v2007_v15  ;;  %vm2084_vm3 = vcmp.eq.s32.totalorder %v433_v41, %v2001_v14 }
  0xdb   : > { %v2040_v24 = vmul.f32 %v421_v23, %v2022_v29  ;;  %v447_v29 = vpop.permute.xlu2 %446 }
  0xdc   : > { %v451_v18 = vsel %vm2887_vm5, %v447_v29, %v449_v30  ;;  %v452_v19 = vsel %vm2887_vm5, %v449_v30, %v447_v29  ;;  %v2928_v29 = vmov 0 }
  0xdd   : > { %v1470_v25 = vpack.i.bf16 %v2040_v24, %v2037_v21  ;;  %vm2145_vm8 = vcmp.eq.s32.totalorder %v451_v18, %v2007_v15  ;;  %vm2150_vm9 = vcmp.eq.s32.totalorder %v452_v19, %v2001_v14 }
  0xde   : > { %v2929_v29 = vsel %vm2150_vm9, 4294967295, %v2928_v29 }
  0xdf   : > { %1471 = vrot.lane.b32.xlu1 %v1470_v25, %s1846_s16  ;;  %1476 = vrot.lane.b32.xlu0 %v1470_v25, %s1848_s12 }
  0xe0   : > { %1486 = vrot.lane.b32.xlu2 %v1470_v25, %s1849_s17  ;;  %v438_v32 = vpop.permute.xlu1 %437 }
  0xe1   : > { %v442_v52 = vsel %vm2888_vm4, %v438_v32, %v440_v27  ;;  %v443_v53 = vsel %vm2888_vm4, %v440_v27, %v438_v32 }
  0xe2   : > { %vm2107_vm6 = vcmp.eq.s32.totalorder %v443_v53, %v2007_v15  ;;  %vm2112_vm7 = vcmp.eq.s32.totalorder %v442_v52, %v2001_v14 }
  0xe3   : > { %v2925_v2 = vsel %vm2112_vm7, 4294967295, %v2924_v2 }
  0xe7   : > { %1481 = vrot.lane.b32.xlu1 %v1470_v25, %s1847_s29  ;;  %455 = vrot.lane.b32.xlu0 %v2007_v15, %s1849_s17 }
  0xe8   : > { %1491 = vrot.lane.b32.xlu2 %v1465_v9, %s1849_s17 }
  0xef   : > { %457 = vrot.lane.b32.xlu1 %v2001_v14, %s1849_s17  ;;  %464 = vrot.lane.b32.xlu0 %v2007_v15, %s1850_s19 }
  0xf0   : > { %496 = vrot.lane.b32.xlu2 %v2001_v14, %s1851_s8 }
  0xf7   : > { %466 = vrot.lane.b32.xlu1 %v2001_v14, %s1850_s19  ;;  %479 = vrot.lane.b32.xlu0 %v2007_v15, %s1852_s20 }
  0xff   : > { %481 = vrot.lane.b32.xlu1 %v2001_v14, %s1852_s20 }
 0x107   : > { %494 = vrot.lane.b32.xlu1 %v2007_v15, %s1851_s8 }
 0x130   : > { %v1457_v34 = vpop.permute.xlu2 %1456 }
 0x131   : > { %v1459_v35 = vunpack.i.h.bf16 %v1457_v34  ;;  %v1458_v36 = vunpack.i.l.bf16 %v1457_v34 }
 0x133   : > { %v532_v39 = vsel %vm2889_vm1, %v1458_v36, %v1459_v35  ;;  %v534_v40 = vsel %vm2889_vm1, %v1459_v35, %v1458_v36  ;;  %v2926_v35 = vmov 0 }
 0x134   : > { %v536_v45 = vmax.f32 %v2026_v0, %v534_v40  ;;  %v537_v46 = vmax.f32 %v2029_v3, %v532_v39  ;;  %v2927_v35 = vsel %vm2145_vm8, 4294967295, %v2926_v35 }
 0x136   : > { %v540_v54 = vsel %vm2079_vm2, %v536_v45, %v2026_v0  ;;  %v541_v55 = vsel %vm2084_vm3, %v537_v46, %v2029_v3 }
 0x13a   : > { %v2088_v49 = vpop.permute.xlu2 %1486 }
 0x13b   : > { %v1489_v41 = vunpack.i.h.bf16 %v2088_v49  ;;  %v1488_v42 = vunpack.i.l.bf16 %v2088_v49 }
 0x142   : > { %v1492_v20 = vpop.permute.xlu2 %1491 }
 0x143   : > { %v1494_v30 = vunpack.i.h.bf16 %v1492_v20  ;;  %v1493_v36 = vunpack.i.l.bf16 %v1492_v20 }
 0x145   : > { %v592_v49 = vsel %vm2886_vm10, %v1493_v36, %v1494_v30  ;;  %v594_v53 = vsel %vm2886_vm10, %v1494_v30, %v1493_v36 }
 0x147   : > { %v1467_v37 = vpop.permute.xlu1 %1466  ;;  %v1462_v38 = vpop.permute.xlu0 %1461 }
 0x148   : > { %v1464_v43 = vunpack.i.h.bf16 %v1462_v38  ;;  %v1463_v44 = vunpack.i.l.bf16 %v1462_v38  ;;  %v1469_v6 = vunpack.i.h.bf16 %v1467_v37  ;;  %v1468_v7 = vunpack.i.l.bf16 %v1467_v37 }
 0x14a   : > { %v552_v50 = vsel %vm2888_vm4, %v1463_v44, %v1464_v43  ;;  %v554_v51 = vsel %vm2888_vm4, %v1464_v43, %v1463_v44  ;;  %v572_v25 = vsel %vm2887_vm5, %v1468_v7, %v1469_v6  ;;  %v574_v26 = vsel %vm2887_vm5, %v1469_v6, %v1468_v7 }
 0x14b   : > { %v556_v58 = vmax.f32 %v540_v54, %v554_v51  ;;  %v557_v59 = vmax.f32 %v541_v55, %v552_v50 }
 0x14d   : > { %v560_v10 = vsel %vm2107_vm6, %v556_v58, %v540_v54  ;;  %v561_v11 = vsel %vm2112_vm7, %v557_v59, %v541_v55  ;;  %v593_v54 = vsel %vm2886_vm10, %v1488_v42, %v1489_v41  ;;  %v595_v55 = vsel %vm2886_vm10, %v1489_v41, %v1488_v42 }
 0x14e   : > { %v576_v28 = vmax.f32 %v560_v10, %v572_v25  ;;  %v577_v31 = vmax.f32 %v561_v11, %v574_v26 }
 0x150   : > { %v580_v45 = vsel %vm2145_vm8, %v576_v28, %v560_v10  ;;  %v581_v46 = vsel %vm2150_vm9, %v577_v31, %v561_v11 }
 0x151   : > { %v1472_v56 = vpop.permute.xlu1 %1471  ;;  %v1477_v57 = vpop.permute.xlu0 %1476 }
 0x152   : > { %v1474_v60 = vunpack.i.h.bf16 %v1472_v56  ;;  %v1473_v61 = vunpack.i.l.bf16 %v1472_v56  ;;  %v1479_v62 = vunpack.i.h.bf16 %v1477_v57  ;;  %v1478_v63 = vunpack.i.l.bf16 %v1477_v57 }
 0x153   : > { %v596_v56 = vmax.f32 %v580_v45, %v592_v49  ;;  %v597_v57 = vmax.f32 %v581_v46, %v594_v53 }
 0x154   : > { %v533_v4 = vsel %vm2889_vm1, %v1473_v61, %v1474_v60  ;;  %v535_v5 = vsel %vm2889_vm1, %v1474_v60, %v1473_v61  ;;  %v553_v16 = vsel %vm2888_vm4, %v1478_v63, %v1479_v62  ;;  %v555_v17 = vsel %vm2888_vm4, %v1479_v62, %v1478_v63 }
 0x155   : > { %v538_v8 = vmax.f32 %v2037_v21, %v535_v5  ;;  %v539_v9 = vmax.f32 %v2040_v24, %v533_v4  ;;  %v2930_v63 = vmov 0  ;;  %v2932_v4 = vmov 0 }
 0x157   : > { %v542_v12 = vsel %vm2079_vm2, %v538_v8, %v2037_v21  ;;  %v543_v13 = vsel %vm2084_vm3, %v539_v9, %v2040_v24 }
 0x158   : > { %v558_v22 = vmax.f32 %v542_v12, %v555_v17  ;;  %v559_v23 = vmax.f32 %v543_v13, %v553_v16 }
 0x159   : > { %v1482_v27 = vpop.permute.xlu1 %1481  ;;  %v456_v52 = vpop.permute.xlu0 %455 }
 0x15a   : > { %v1484_v32 = vunpack.i.h.bf16 %v1482_v27  ;;  %v1483_v34 = vunpack.i.l.bf16 %v1482_v27  ;;  %v562_v37 = vsel %vm2107_vm6, %v558_v22, %v542_v12  ;;  %v563_v38 = vsel %vm2112_vm7, %v559_v23, %v543_v13  ;;  %v497_v12 = vpop.permute.xlu2 %496 }
 0x15b   : > { %vm2938_vm7 = vcmp.lt.s32.totalorder %v2065_v33, 32 }
 0x15c   : > { %v573_v39 = vsel %vm2887_vm5, %v1483_v34, %v1484_v32  ;;  %v575_v40 = vsel %vm2887_vm5, %v1484_v32, %v1483_v34 }
 0x15d   : > { %v578_v43 = vmax.f32 %v562_v37, %v573_v39  ;;  %v579_v44 = vmax.f32 %v563_v38, %v575_v40 }
 0x15f   : > { %v582_v50 = vsel %vm2145_vm8, %v578_v43, %v562_v37  ;;  %v583_v51 = vsel %vm2150_vm9, %v579_v44, %v563_v38 }
 0x160   : > { %v598_v59 = vmax.f32 %v582_v50, %v593_v54  ;;  %v599_v60 = vmax.f32 %v583_v51, %v595_v55 }
 0x161   : > { %v458_v58 = vpop.permute.xlu1 %457  ;;  %v465_v13 = vpop.permute.xlu0 %464 }
 0x162   : > { %v460_v61 = vsel %vm2886_vm10, %v456_v52, %v458_v58  ;;  %v461_v62 = vsel %vm2886_vm10, %v458_v58, %v456_v52 }
 0x163   : > { %vm2186_vm11 = vcmp.eq.s32.totalorder %v460_v61, %v2007_v15  ;;  %vm2191_vm12 = vcmp.eq.s32.totalorder %v461_v62, %v2001_v14 }
 0x164   : > { %v2931_v63 = vsel %vm2186_vm11, 4294967295, %v2930_v63  ;;  %v2933_v4 = vsel %vm2191_vm12, 4294967295, %v2932_v4  ;;  %v2197_v5 = vsel %vm2186_vm11, %v596_v56, %v580_v45  ;;  %v2201_v6 = vsel %vm2191_vm12, %v597_v57, %v581_v46 }
 0x165   : > { %v2205_v7 = vsel %vm2186_vm11, %v598_v59, %v582_v50  ;;  %v2209_v8 = vsel %vm2191_vm12, %v599_v60, %v583_v51  ;;  %v1500_v10 = vpack.i.bf16 %v2201_v6, %v2197_v5 }
 0x166   : > { %v1515_v9 = vpack.i.bf16 %v2209_v8, %v2205_v7 }
 0x167   : > { %1501 = vrot.lane.b32.xlu0 %v1500_v10, %s1852_s20  ;;  %1496 = vrot.lane.b32.xlu2 %v1500_v10, %s1850_s19 }
 0x168   : > { %1516 = vrot.lane.b32.xlu1 %v1515_v9, %s1851_s8 }
 0x169   : > { %v467_v11 = vpop.permute.xlu1 %466  ;;  %v480_v18 = vpop.permute.xlu0 %479 }
 0x16a   : > { %v470_v22 = vsel %vm2896_vm13, %v467_v11, %v465_v13  ;;  %v469_v26 = vsel %vm2896_vm13, %v465_v13, %v467_v11 }
 0x16b   : > { %v471_v27 = vsub.s32 %v470_v22, %v2007_v15  ;;  %v472_v37 = vsub.s32 %v469_v26, %v2001_v14 }
 0x16d   : > { %vm473_vm0 = vcmp.le.s32.totalorder %v471_v27, 2  ;;  %vm475_vm10 = vcmp.ge.s32.totalorder %v471_v27, 4294967294  ;;  %vm474_vm5 = vcmp.le.s32.totalorder %v472_v37, 2  ;;  %vm476_vm4 = vcmp.ge.s32.totalorder %v472_v37, 4294967294 }
 0x16e   : > { %vm2265_vm1 = vmand %vm473_vm0, %vm475_vm10 }
 0x16f   : > { %511 = vrot.lane.b32.xlu0 %v2001_v14, %s1853_s26  ;;  %1506 = vrot.lane.b32.xlu2 %v1515_v9, %s1850_s19  ;;  %vm2272_vm11 = vmand %vm474_vm5, %vm476_vm4  ;;  %vm2903_vm4 = vcmp.lt.s32.totalorder %v2065_v33, 96 }
 0x170   : > { %1521 = vrot.lane.b32.xlu1 %v1500_v10, %s1851_s8 }
 0x171   : > { %v482_v16 = vpop.permute.xlu1 %481 }
 0x172   : > { %v485_v30 = vsel %vm2891_vm15, %v482_v16, %v480_v18  ;;  %v484_v38 = vsel %vm2891_vm15, %v480_v18, %v482_v16 }
 0x173   : > { %v486_v44 = vsub.s32 %v485_v30, %v2007_v15  ;;  %v487_v50 = vsub.s32 %v484_v38, %v2001_v14 }
 0x175   : > { %vm488_vm12 = vcmp.le.s32.totalorder %v486_v44, 2  ;;  %vm489_vm10 = vcmp.le.s32.totalorder %v487_v50, 2  ;;  %vm490_vm0 = vcmp.ge.s32.totalorder %v486_v44, 4294967294  ;;  %vm491_vm8 = vcmp.ge.s32.totalorder %v487_v50, 4294967294 }
 0x176   : > { %vm2306_vm5 = vmand %vm488_vm12, %vm490_vm0 }
 0x177   : > { %1511 = vrot.lane.b32.xlu0 %v1515_v9, %s1852_s20  ;;  %509 = vrot.lane.b32.xlu2 %v2007_v15, %s1853_s26  ;;  %vm2320_vm9 = vmand %vm489_vm10, %vm491_vm8 }
 0x179   : > { %v495_v19 = vpop.permute.xlu1 %494 }
 0x17a   : > { %v499_v32 = vsel %vm2890_vm14, %v495_v19, %v497_v12  ;;  %v500_v34 = vsel %vm2890_vm14, %v497_v12, %v495_v19  ;;  %vm2939_vm14 = vmmov %vm2938_vm7 }
 0x17b   : > { %v2249_v42 = vsub.s32 %v499_v32, %v2007_v15  ;;  %v2252_v43 = vsub.s32 %v500_v34, %v2001_v14 }
 0x17d   : > { %vm505_vm15 = vcmp.ge.s32.totalorder %v2249_v42, 4294967294  ;;  %vm2950_vm8 = vcmp.le.s32.totalorder %v2249_v42, 2 }
 0x17f   : > { %1531 = vrot.lane.b32.xlu0 %v1500_v10, %s1853_s26  ;;  %1526 = vrot.lane.b32.xlu2 %v1515_v9, %s1853_s26 }
 0x1c1   : > { %v1497_v17 = vpop.permute.xlu2 %1496 }
 0x1c2   : > { %v1499_v28 = vunpack.i.h.bf16 %v1497_v17  ;;  %v1498_v31 = vunpack.i.l.bf16 %v1497_v17 }
 0x1c4   : > { %v614_v41 = vsel %vm2896_vm13, %v1499_v28, %v1498_v31  ;;  %v612_v46 = vsel %vm2896_vm13, %v1498_v31, %v1499_v28 }
 0x1c5   : > { %v616_v49 = vmax.f32 %v2197_v5, %v614_v41  ;;  %v617_v56 = vmax.f32 %v2201_v6, %v612_v46 }
 0x1c7   : > { %v620_v9 = vsel %vm2265_vm1, %v616_v49, %v2197_v5  ;;  %v621_v18 = vsel %vm2272_vm11, %v617_v56, %v2201_v6 }
 0x1c9   : > { %v1507_v20 = vpop.permute.xlu2 %1506 }
 0x1ca   : > { %v1509_v39 = vunpack.i.h.bf16 %v1507_v20  ;;  %v1508_v40 = vunpack.i.l.bf16 %v1507_v20 }
 0x1cc   : > { %v613_v53 = vsel %vm2896_vm13, %v1508_v40, %v1509_v39  ;;  %v615_v54 = vsel %vm2896_vm13, %v1509_v39, %v1508_v40 }
 0x1cd   : > { %v618_v60 = vmax.f32 %v2205_v7, %v615_v54  ;;  %v619_v61 = vmax.f32 %v2209_v8, %v613_v53 }
 0x1cf   : > { %v622_v31 = vsel %vm2265_vm1, %v618_v60, %v2205_v7 }
 0x1d1   : > { %v510_v36 = vpop.permute.xlu2 %509 }
 0x1d9   : > { %v1502_v23 = vpop.permute.xlu0 %1501  ;;  %v1527_v10 = vpop.permute.xlu2 %1526 }
 0x1da   : > { %v2232_v25 = vpop.permute.xlu1 %1516  ;;  %v1504_v51 = vunpack.i.h.bf16 %v1502_v23  ;;  %v1503_v52 = vunpack.i.l.bf16 %v1502_v23  ;;  %v1529_v27 = vunpack.i.h.bf16 %v1527_v10  ;;  %v1528_v30 = vunpack.i.l.bf16 %v1527_v10 }
 0x1db   : > { %v1519_v16 = vunpack.i.h.bf16 %v2232_v25  ;;  %v1518_v17 = vunpack.i.l.bf16 %v2232_v25  ;;  %v623_v25 = vsel %vm2272_vm11, %v619_v61, %v2209_v8  ;;  %v2946_v8 = vmov 0  ;;  %v1004_v61 = vld [vmem:[%s2883_s4] sm:$0xff] }
 0x1dc   : > { %v634_v59 = vsel %vm2938_vm7, %v1504_v51, %v1503_v52  ;;  %v632_v62 = vsel %vm2939_vm14, %v1503_v52, %v1504_v51  ;;  %vm2942_vm7 = vcmp.lt.s32.totalorder %v2065_v33, 112  ;;  %v2947_v8 = vsel %vm2320_vm9, 4294967295, %v2946_v8 }
 0x1dd   : > { %v636_v19 = vmax.f32 %v620_v9, %v634_v59  ;;  %v637_v22 = vmax.f32 %v621_v18, %v632_v62  ;;  %vm2943_vm14 = vmmov %vm2942_vm7  ;;  %v2961_v10 = vmov 0 }
 0x1de   : > { %vm2948_vm12 = vmmov %vm2942_vm7 }
 0x1df   : > { %v653_v39 = vsel %vm2948_vm12, %v1518_v17, %v1519_v16  ;;  %vm2949_vm0 = vmmov %vm2942_vm7  ;;  %v640_v41 = vsel %vm2306_vm5, %v636_v19, %v620_v9  ;;  %v641_v44 = vsel %vm2320_vm9, %v637_v22, %v621_v18 }
 0x1e0   : > { %v655_v40 = vsel %vm2949_vm0, %v1519_v16, %v1518_v17  ;;  %vm2957_vm0 = vcmp.lt.s32.totalorder %v2065_v33, 96 }
 0x1e1   : > { %v512_v45 = vpop.permute.xlu0 %511  ;;  %v673_v54 = vsel %vm2957_vm0, %v1528_v30, %v1529_v27 }
 0x1e2   : > { %v1522_v57 = vpop.permute.xlu1 %1521  ;;  %v514_v13 = vsel %vm2903_vm4, %v510_v36, %v512_v45  ;;  %v515_v5 = vsel %vm2903_vm4, %v512_v45, %v510_v36  ;;  %vm2944_vm4 = vcmp.lt.s32.totalorder %v2065_v33, 32 }
 0x1e3   : > { %v1524_v11 = vunpack.i.h.bf16 %v1522_v57  ;;  %v1523_v12 = vunpack.i.l.bf16 %v1522_v57  ;;  %v516_v28 = vsub.s32 %v514_v13, %v2007_v15  ;;  %vm2945_vm13 = vmmov %vm2944_vm4  ;;  %v517_v36 = vsub.s32 %v515_v5, %v2001_v14 }
 0x1e5   : > { %v652_v32 = vsel %vm2942_vm7, %v1523_v12, %v1524_v11  ;;  %v654_v15 = vsel %vm2943_vm14, %v1524_v11, %v1523_v12  ;;  %vm518_vm10 = vcmp.le.s32.totalorder %v516_v28, 2  ;;  %vm2953_vm7 = vcmp.ge.s32.totalorder %v2252_v43, 4294967294 }
 0x1e6   : > { %v656_v45 = vmax.f32 %v640_v41, %v652_v32  ;;  %v657_v46 = vmax.f32 %v641_v44, %v654_v15  ;;  %vm2954_vm14 = vcmp.le.s32.totalorder %v2252_v43, 2 }
 0x1e7   : > { %vm2349_vm12 = vmand %vm2954_vm14, %vm2953_vm7 }
 0x1e8   : > { %v661_v12 = vsel %vm2349_vm12, %v657_v46, %v641_v44 }
 0x1e9   : > { %v1512_v20 = vpop.permute.xlu0 %1511 }
 0x1ea   : > { %v1514_v23 = vunpack.i.h.bf16 %v1512_v20  ;;  %v1513_v26 = vunpack.i.l.bf16 %v1512_v20 }
 0x1ec   : > { %v633_v34 = vsel %vm2944_vm4, %v1513_v26, %v1514_v23  ;;  %v635_v7 = vsel %vm2945_vm13, %v1514_v23, %v1513_v26  ;;  %vm2341_vm13 = vmand %vm2950_vm8, %vm505_vm15  ;;  %vm520_vm4 = vcmp.ge.s32.totalorder %v516_v28, 4294967294  ;;  %vm519_vm8 = vcmp.le.s32.totalorder %v517_v36, 2 }
 0x1ed   : > { %v638_v37 = vmax.f32 %v622_v31, %v635_v7  ;;  %v639_v38 = vmax.f32 %v623_v25, %v633_v34  ;;  %vm2958_vm15 = vmmov %vm2957_vm0  ;;  %v660_v11 = vsel %vm2341_vm13, %v656_v45, %v640_v41 }
 0x1ee   : > { %v675_v42 = vsel %vm2958_vm15, %v1529_v27, %v1528_v30  ;;  %vm2361_vm7 = vmand %vm518_vm10, %vm520_vm4 }
 0x1ef   : > { %v642_v50 = vsel %vm2306_vm5, %v638_v37, %v622_v31  ;;  %v643_v14 = vsel %vm2320_vm9, %v639_v38, %v623_v25  ;;  %vm521_vm9 = vcmp.ge.s32.totalorder %v517_v36, 4294967294  ;;  %vm2963_vm10 = vmmov %vm2957_vm0 }
 0x1f0   : > { %v658_v52 = vmax.f32 %v642_v50, %v653_v39  ;;  %v659_v49 = vmax.f32 %v643_v14, %v655_v40  ;;  %vm2365_vm14 = vmand %vm519_vm8, %vm521_vm9  ;;  %vm2964_vm9 = vcmp.lt.s32.totalorder %v2065_v33, 1 }
 0x1f1   : > { %v1532_v56 = vpop.permute.xlu0 %1531  ;;  %v2962_v10 = vsel %vm2365_vm14, 4294967295, %v2961_v10  ;;  %vm2965_vm4 = vmmov %vm2964_vm9 }
 0x1f2   : > { %v662_v57 = vsel %vm2341_vm13, %v658_v52, %v642_v50  ;;  %v663_v59 = vsel %vm2349_vm12, %v659_v49, %v643_v14  ;;  %v1534_v43 = vunpack.i.h.bf16 %v1532_v56  ;;  %v1533_v60 = vunpack.i.l.bf16 %v1532_v56  ;;  %vm2966_vm15 = vmmov %vm2965_vm4 }
 0x1f3   : > { %v678_v62 = vmax.f32 %v662_v57, %v673_v54  ;;  %v679_v9 = vmax.f32 %v663_v59, %v675_v42  ;;  %vm2967_vm8 = vmmov %vm2965_vm4 }
 0x1f4   : > { %v672_v13 = vsel %vm2957_vm0, %v1533_v60, %v1534_v43  ;;  %v674_v16 = vsel %vm2963_vm10, %v1534_v43, %v1533_v60  ;;  %vm2968_vm0 = vcmp.lt.s32.totalorder %v2065_v33, 2 }
 0x1f5   : > { %v2379_v17 = vsel %vm2361_vm7, %v678_v62, %v662_v57  ;;  %v2383_v18 = vsel %vm2365_vm14, %v679_v9, %v663_v59  ;;  %v676_v19 = vmax.f32 %v660_v11, %v672_v13  ;;  %v677_v20 = vmax.f32 %v661_v12, %v674_v16  ;;  %vm2969_vm10 = vmmov %vm2968_vm0 }
 0x1f6   : > { %v1550_v22 = vpack.i.bf16 %v2383_v18, %v2379_v17 }
 0x1f7   : > { %v2389_v5 = vsel %vm2361_vm7, %v676_v19, %v660_v11  ;;  %v2393_v23 = vsel %vm2365_vm14, %v677_v20, %v661_v12 }
 0x1f8   : > { %1551 = vrot.lane.b32.xlu0 %v1550_v22, %s1848_s12  ;;  %1541 = vrot.lane.b32.xlu1 %v1550_v22, %s1846_s16  ;;  %v1535_v26 = vpack.i.bf16 %v2393_v23, %v2389_v5 }
 0x1fa   : > { %1536 = vrot.lane.b32.xlu2 %v1535_v26, %s1846_s16 }
 0x200   : > { %1556 = vrot.lane.b32.xlu0 %v1535_v26, %s1847_s29  ;;  %1546 = vrot.lane.b32.xlu1 %v1535_v26, %s1848_s12 }
 0x202   : > { %1561 = vrot.lane.b32.xlu2 %v1550_v22, %s1847_s29 }
 0x208   : > { %1566 = vrot.lane.b32.xlu1 %v1550_v22, %s1849_s17 }
 0x20a   : > { %1571 = vrot.lane.b32.xlu2 %v1535_v26, %s1849_s17 }
 0x254   : > { %v1537_v27 = vpop.permute.xlu2 %1536 }
 0x255   : > { %v1539_v31 = vunpack.i.h.bf16 %v1537_v27  ;;  %v1538_v25 = vunpack.i.l.bf16 %v1537_v27 }
 0x257   : > { %v692_v30 = vsel %vm2964_vm9, %v1538_v25, %v1539_v31  ;;  %v694_v36 = vsel %vm2965_vm4, %v1539_v31, %v1538_v25  ;;  %vm2970_vm9 = vmmov %vm2968_vm0 }
 0x258   : > { %v696_v45 = vmax.f32 %v2389_v5, %v694_v36  ;;  %v697_v46 = vmax.f32 %v2393_v23, %v692_v30  ;;  %vm2971_vm4 = vmmov %vm2968_vm0 }
 0x25a   : > { %v700_v13 = vsel %vm2079_vm2, %v696_v45, %v2389_v5  ;;  %v701_v16 = vsel %vm2084_vm3, %v697_v46, %v2393_v23 }
 0x25c   : > { %v1562_v28 = vpop.permute.xlu2 %1561 }
 0x25d   : > { %v1564_v43 = vunpack.i.h.bf16 %v1562_v28  ;;  %v1563_v60 = vunpack.i.l.bf16 %v1562_v28 }
 0x264   : > { %v1572_v52 = vpop.permute.xlu2 %1571 }
 0x265   : > { %v1574_v19 = vunpack.i.h.bf16 %v1572_v52  ;;  %v1573_v20 = vunpack.i.l.bf16 %v1572_v52 }
 0x26a   : > { %v1552_v32 = vpop.permute.xlu0 %1551  ;;  %v1542_v15 = vpop.permute.xlu1 %1541 }
 0x26b   : > { %v1544_v34 = vunpack.i.h.bf16 %v1542_v15  ;;  %v1543_v7 = vunpack.i.l.bf16 %v1542_v15  ;;  %v1554_v37 = vunpack.i.h.bf16 %v1552_v32  ;;  %v1553_v38 = vunpack.i.l.bf16 %v1552_v32 }
 0x26d   : > { %v693_v39 = vsel %vm2966_vm15, %v1543_v7, %v1544_v34  ;;  %v695_v40 = vsel %vm2967_vm8, %v1544_v34, %v1543_v7  ;;  %v713_v49 = vsel %vm2968_vm0, %v1553_v38, %v1554_v37  ;;  %v715_v54 = vsel %vm2969_vm10, %v1554_v37, %v1553_v38 }
 0x26e   : > { %v698_v41 = vmax.f32 %v2379_v17, %v695_v40  ;;  %v699_v44 = vmax.f32 %v2383_v18, %v693_v39  ;;  %vm2972_vm15 = vnez %v2925_v2  ;;  %vm2973_vm8 = vcmp.lt.s32.totalorder %v2065_v33, 127 }
 0x26f   : > { %v733_v32 = vsel %vm2973_vm8, %v1563_v60, %v1564_v43  ;;  %vm2974_vm0 = vmmov %vm2973_vm8 }
 0x270   : > { %v702_v50 = vsel %vm2079_vm2, %v698_v41, %v2379_v17  ;;  %v703_v14 = vsel %vm2084_vm3, %v699_v44, %v2383_v18  ;;  %v735_v15 = vsel %vm2974_vm0, %v1564_v43, %v1563_v60  ;;  %vm2975_vm10 = vmmov %vm2974_vm0 }
 0x271   : > { %v718_v42 = vmax.f32 %v702_v50, %v715_v54  ;;  %v719_v56 = vmax.f32 %v703_v14, %v713_v49 }
 0x272   : > { %v1557_v57 = vpop.permute.xlu0 %1556  ;;  %v1547_v59 = vpop.permute.xlu1 %1546 }
 0x273   : > { %v1549_v62 = vunpack.i.h.bf16 %v1547_v59  ;;  %v1548_v9 = vunpack.i.l.bf16 %v1547_v59  ;;  %v1559_v11 = vunpack.i.h.bf16 %v1557_v57  ;;  %v1558_v12 = vunpack.i.l.bf16 %v1557_v57 }
 0x274   : > { %v722_v31 = vsel %vm2107_vm6, %v718_v42, %v702_v50  ;;  %v723_v25 = vsel %vm2972_vm15, %v719_v56, %v703_v14 }
 0x275   : > { %v712_v22 = vsel %vm2970_vm9, %v1548_v9, %v1549_v62  ;;  %v714_v26 = vsel %vm2971_vm4, %v1549_v62, %v1548_v9  ;;  %v732_v34 = vsel %vm2975_vm10, %v1558_v12, %v1559_v11  ;;  %vm2976_vm9 = vmmov %vm2974_vm0  ;;  %v738_v39 = vmax.f32 %v722_v31, %v733_v32 }
 0x276   : > { %v716_v27 = vmax.f32 %v700_v13, %v714_v26  ;;  %v717_v28 = vmax.f32 %v701_v16, %v712_v22  ;;  %v734_v7 = vsel %vm2976_vm9, %v1559_v11, %v1558_v12  ;;  %v739_v40 = vmax.f32 %v723_v25, %v735_v15 }
 0x277   : > { %vm2977_vm4 = vcmp.lt.s32.totalorder %v2065_v33, 126  ;;  %vm2979_vm0 = vnez %v2927_v35  ;;  %vm2980_vm10 = vnez %v2929_v29 }
 0x278   : > { %v720_v30 = vsel %vm2107_vm6, %v716_v27, %v700_v13  ;;  %v721_v36 = vsel %vm2972_vm15, %v717_v28, %v701_v16  ;;  %v752_v41 = vsel %vm2977_vm4, %v1573_v20, %v1574_v19  ;;  %vm2978_vm8 = vmmov %vm2977_vm4  ;;  %v742_v42 = vsel %vm2979_vm0, %v738_v39, %v722_v31 }
 0x279   : > { %v736_v37 = vmax.f32 %v720_v30, %v732_v34  ;;  %v737_v38 = vmax.f32 %v721_v36, %v734_v7  ;;  %v754_v44 = vsel %vm2978_vm8, %v1574_v19, %v1573_v20  ;;  %v743_v56 = vsel %vm2980_vm10, %v739_v40, %v723_v25  ;;  %vm2981_vm9 = vmmov %vm2977_vm4 }
 0x27a   : > { %v1567_v45 = vpop.permute.xlu1 %1566  ;;  %vm2982_vm8 = vnez %v2931_v63  ;;  %vm2983_vm15 = vnez %v2933_v4 }
 0x27b   : > { %v740_v46 = vsel %vm2979_vm0, %v736_v37, %v720_v30  ;;  %v741_v50 = vsel %vm2980_vm10, %v737_v38, %v721_v36  ;;  %v1569_v14 = vunpack.i.h.bf16 %v1567_v45  ;;  %v1568_v52 = vunpack.i.l.bf16 %v1567_v45 }
 0x27c   : > { %v756_v49 = vmax.f32 %v740_v46, %v752_v41  ;;  %v757_v54 = vmax.f32 %v741_v50, %v754_v44  ;;  %vm2988_vm10 = vcmp.lt.s32.totalorder %v2065_v33, 32 }
 0x27d   : > { %v753_v57 = vsel %vm2981_vm9, %v1568_v52, %v1569_v14  ;;  %v755_v59 = vsel %vm2977_vm4, %v1569_v14, %v1568_v52  ;;  %vm2984_vm9 = vcmp.lt.s32.totalorder %v2065_v33, 16  ;;  %vm2989_vm0 = vmmov %vm2988_vm10 }
 0x27e   : > { %v758_v43 = vmax.f32 %v742_v42, %v753_v57  ;;  %v759_v60 = vmax.f32 %v743_v56, %v755_v59  ;;  %v760_v62 = vsel %vm2982_vm8, %v756_v49, %v740_v46  ;;  %v761_v9 = vsel %vm2983_vm15, %v757_v54, %v741_v50  ;;  %vm2985_vm4 = vmmov %vm2984_vm9 }
 0x27f   : > { %v1575_v11 = vpack.i.bf16 %v761_v9, %v760_v62 }
 0x280   : > { %v762_v12 = vsel %vm2982_vm8, %v758_v43, %v742_v42  ;;  %v763_v13 = vsel %vm2983_vm15, %v759_v60, %v743_v56  ;;  %vm2986_vm15 = vmmov %vm2985_vm4 }
 0x281   : > { %1576 = vrot.lane.b32.xlu1 %v1575_v11, %s1850_s19  ;;  %v1590_v16 = vpack.i.bf16 %v763_v13, %v762_v12  ;;  %vm2987_vm8 = vmmov %vm2985_vm4 }
 0x283   : > { %1591 = vrot.lane.b32.xlu2 %v1590_v16, %s1852_s20  ;;  %1581 = vrot.lane.b32.xlu0 %v1590_v16, %s1850_s19 }
 0x289   : > { %1601 = vrot.lane.b32.xlu1 %v1590_v16, %s1851_s8 }
 0x28b   : > { %1596 = vrot.lane.b32.xlu2 %v1575_v11, %s1851_s8  ;;  %1586 = vrot.lane.b32.xlu0 %v1575_v11, %s1852_s20 }
 0x291   : > { %1611 = vrot.lane.b32.xlu1 %v1575_v11, %s1853_s26 }
 0x293   : > { %1606 = vrot.lane.b32.xlu0 %v1590_v16, %s1853_s26 }
 0x2dd   : > { %v1592_v19 = vpop.permute.xlu2 %1591 }
 0x2de   : > { %v1594_v25 = vunpack.i.h.bf16 %v1592_v19  ;;  %v1593_v32 = vunpack.i.l.bf16 %v1592_v19 }
 0x2e0   : > { %v793_v38 = vsel %vm2988_vm10, %v1593_v32, %v1594_v25  ;;  %v795_v39 = vsel %vm2989_vm0, %v1594_v25, %v1593_v32  ;;  %vm2991_vm0 = vcmp.lt.s32.totalorder %v2065_v33, 112 }
 0x2e1   : > { %vm2992_vm10 = vmmov %vm2991_vm0 }
 0x2e5   : > { %v1597_v45 = vpop.permute.xlu2 %1596 }
 0x2e6   : > { %v1599_v56 = vunpack.i.h.bf16 %v1597_v45  ;;  %v1598_v57 = vunpack.i.l.bf16 %v1597_v45 }
 0x2f3   : > { %v1577_v20 = vpop.permute.xlu1 %1576 }
 0x2f4   : > { %v1579_v26 = vunpack.i.h.bf16 %v1577_v20  ;;  %v1578_v27 = vunpack.i.l.bf16 %v1577_v20 }
 0x2f5   : > { %v1582_v22 = vpop.permute.xlu0 %1581 }
 0x2f6   : > { %v1584_v28 = vunpack.i.h.bf16 %v1582_v22  ;;  %v1583_v31 = vunpack.i.l.bf16 %v1582_v22  ;;  %v772_v36 = vsel %vm2986_vm15, %v1578_v27, %v1579_v26  ;;  %v774_v37 = vsel %vm2987_vm8, %v1579_v26, %v1578_v27 }
 0x2f7   : > { %v776_v49 = vmax.f32 %v760_v62, %v774_v37  ;;  %v777_v54 = vmax.f32 %v761_v9, %v772_v36  ;;  %vm2990_vm15 = vnez %v2947_v8  ;;  %vm2993_vm8 = vcmp.lt.s32.totalorder %v2065_v33, 32 }
 0x2f8   : > { %v773_v15 = vsel %vm2984_vm9, %v1583_v31, %v1584_v28  ;;  %v775_v34 = vsel %vm2985_vm4, %v1584_v28, %v1583_v31  ;;  %vm2994_vm9 = vmmov %vm2993_vm8  ;;  %v814_v31 = vsel %vm2991_vm0, %v1599_v56, %v1598_v57 }
 0x2f9   : > { %v778_v7 = vmax.f32 %v762_v12, %v775_v34  ;;  %v779_v30 = vmax.f32 %v763_v13, %v773_v15  ;;  %v780_v16 = vsel %vm2265_vm1, %v776_v49, %v760_v62  ;;  %v781_v19 = vsel %vm2272_vm11, %v777_v54, %v761_v9  ;;  %vm2995_vm4 = vmmov %vm2991_vm0 }
 0x2fa   : > { %v812_v28 = vsel %vm2995_vm4, %v1598_v57, %v1599_v56 }
 0x2fb   : > { %v782_v40 = vsel %vm2265_vm1, %v778_v7, %v762_v12  ;;  %v783_v41 = vsel %vm2272_vm11, %v779_v30, %v763_v13  ;;  %v1602_v44 = vpop.permute.xlu1 %1601 }
 0x2fc   : > { %v798_v46 = vmax.f32 %v782_v40, %v795_v39  ;;  %v799_v50 = vmax.f32 %v783_v41, %v793_v38  ;;  %v1604_v14 = vunpack.i.h.bf16 %v1602_v44  ;;  %v1603_v52 = vunpack.i.l.bf16 %v1602_v44 }
 0x2fd   : > { %v1587_v42 = vpop.permute.xlu0 %1586 }
 0x2fe   : > { %v1589_v59 = vunpack.i.h.bf16 %v1587_v42  ;;  %v1588_v43 = vunpack.i.l.bf16 %v1587_v42  ;;  %v802_v60 = vsel %vm2306_vm5, %v798_v46, %v782_v40  ;;  %v803_v11 = vsel %vm2990_vm15, %v799_v50, %v783_v41 }
 0x2ff   : > { %v813_v12 = vsel %vm2991_vm0, %v1603_v52, %v1604_v14  ;;  %v815_v13 = vsel %vm2992_vm10, %v1604_v14, %v1603_v52  ;;  %vm2996_vm10 = vcmp.lt.s32.totalorder %v2065_v33, 96  ;;  %vm3000_vm0 = vcmp.lt.s32.totalorder %v2065_v33, 1 }
 0x300   : > { %v792_v20 = vsel %vm2993_vm8, %v1588_v43, %v1589_v59  ;;  %v794_v22 = vsel %vm2994_vm9, %v1589_v59, %v1588_v43  ;;  %v818_v25 = vmax.f32 %v802_v60, %v813_v12  ;;  %v819_v32 = vmax.f32 %v803_v11, %v815_v13  ;;  %vm2997_vm8 = vmmov %vm2996_vm10 }
 0x301   : > { %v796_v26 = vmax.f32 %v780_v16, %v794_v22  ;;  %v797_v27 = vmax.f32 %v781_v19, %v792_v20  ;;  %vm2998_vm9 = vmmov %vm2997_vm8 }
 0x302   : > { %v822_v46 = vsel %vm2341_vm13, %v818_v25, %v802_v60  ;;  %v823_v50 = vsel %vm2349_vm12, %v819_v32, %v803_v11  ;;  %vm2999_vm4 = vmmov %vm2997_vm8 }
 0x303   : > { %v1612_v62 = vpop.permute.xlu1 %1611  ;;  %v800_v9 = vsel %vm2306_vm5, %v796_v26, %v780_v16  ;;  %v801_v7 = vsel %vm2990_vm15, %v797_v27, %v781_v19 }
 0x304   : > { %v1614_v15 = vunpack.i.h.bf16 %v1612_v62  ;;  %v1613_v34 = vunpack.i.l.bf16 %v1612_v62  ;;  %v816_v30 = vmax.f32 %v800_v9, %v812_v28  ;;  %v817_v36 = vmax.f32 %v801_v7, %v814_v31 }
 0x305   : > { %v1607_v37 = vpop.permute.xlu0 %1606 }
 0x306   : > { %v832_v38 = vsel %vm2996_vm10, %v1613_v34, %v1614_v15  ;;  %v834_v39 = vsel %vm2997_vm8, %v1614_v15, %v1613_v34  ;;  %v1609_v40 = vunpack.i.h.bf16 %v1607_v37  ;;  %v1608_v41 = vunpack.i.l.bf16 %v1607_v37  ;;  %vm3001_vm10 = vmmov %vm3000_vm0 }
 0x307   : > { %v820_v44 = vsel %vm2341_vm13, %v816_v30, %v800_v9  ;;  %v821_v45 = vsel %vm2349_vm12, %v817_v36, %v801_v7  ;;  %vm3002_vm8 = vmmov %vm3000_vm0 }
 0x308   : > { %v836_v14 = vmax.f32 %v820_v44, %v832_v38  ;;  %v837_v52 = vmax.f32 %v821_v45, %v834_v39  ;;  %v833_v49 = vsel %vm2998_vm9, %v1608_v41, %v1609_v40  ;;  %v835_v54 = vsel %vm2999_vm4, %v1609_v40, %v1608_v41  ;;  %vm3003_vm9 = vmmov %vm3000_vm0 }
 0x309   : > { %v838_v42 = vmax.f32 %v822_v46, %v833_v49  ;;  %v839_v56 = vmax.f32 %v823_v50, %v835_v54  ;;  %vm3004_vm4 = vcmp.lt.s32.totalorder %v2065_v33, 2 }
 0x30a   : > { %v2543_v57 = vsel %vm2361_vm7, %v836_v14, %v820_v44  ;;  %v2547_v59 = vsel %vm2365_vm14, %v837_v52, %v821_v45 }
 0x30b   : > { %v2551_v43 = vsel %vm2361_vm7, %v838_v42, %v822_v46  ;;  %v2555_v60 = vsel %vm2365_vm14, %v839_v56, %v823_v50  ;;  %v1615_v11 = vpack.i.bf16 %v2547_v59, %v2543_v57  ;;  %vm3015_vm14 = vnez %v2927_v35 }
 0x30c   : > { %v1630_v12 = vpack.i.bf16 %v2555_v60, %v2551_v43 }
 0x30d   : > { %1616 = vrot.lane.b32.xlu0 %v1615_v11, %s1846_s16 }
 0x30e   : > { %1631 = vrot.lane.b32.xlu1 %v1630_v12, %s1848_s12  ;;  %1621 = vrot.lane.b32.xlu2 %v1630_v12, %s1846_s16 }
 0x315   : > { %1641 = vrot.lane.b32.xlu0 %v1630_v12, %s1847_s29 }
 0x316   : > { %1636 = vrot.lane.b32.xlu1 %v1615_v11, %s1847_s29  ;;  %1626 = vrot.lane.b32.xlu2 %v1615_v11, %s1848_s12  ;;  %s1275_s12 = scalar_lea.hbm %s2885_s6, %s1379_s28 }
 0x31d   : > { %1651 = vrot.lane.b32.xlu0 %v1615_v11, %s1849_s17 }
 0x31e   : > { %1646 = vrot.lane.b32.xlu2 %v1630_v12, %s1849_s17  ;;  %s1278_s17 = sshll.u32 %s1275_s12, 4  ;;  %s1279_s17 = int_to_ptr.hbm [resolvable:$true] %s1278_s17 }
 0x368   : > { %v1622_v13 = vpop.permute.xlu2 %1621 }
 0x369   : > { %v1624_v16 = vunpack.i.h.bf16 %v1622_v13  ;;  %v1623_v19 = vunpack.i.l.bf16 %v1622_v13 }
 0x36b   : > { %v853_v22 = vsel %vm3000_vm0, %v1623_v19, %v1624_v16  ;;  %v855_v26 = vsel %vm3001_vm10, %v1624_v16, %v1623_v19  ;;  %vm3005_vm0 = vmmov %vm3004_vm4 }
 0x36c   : > { %v858_v32 = vmax.f32 %v2551_v43, %v855_v26  ;;  %v859_v62 = vmax.f32 %v2555_v60, %v853_v22  ;;  %vm3006_vm10 = vmmov %vm3005_vm0 }
 0x36e   : > { %v862_v44 = vsel %vm2079_vm2, %v858_v32, %v2551_v43  ;;  %v863_v45 = vsel %vm2084_vm3, %v859_v62, %v2555_v60 }
 0x370   : > { %v1627_v20 = vpop.permute.xlu2 %1626 }
 0x371   : > { %v1629_v9 = vunpack.i.h.bf16 %v1627_v20  ;;  %v1628_v7 = vunpack.i.l.bf16 %v1627_v20 }
 0x373   : > { %v872_v49 = vsel %vm3006_vm10, %v1628_v7, %v1629_v9  ;;  %vm3013_vm10 = vcmp.lt.s32.totalorder %v2065_v33, 126 }
 0x378   : > { %v1647_v41 = vpop.permute.xlu2 %1646 }
 0x379   : > { %v1649_v56 = vunpack.i.h.bf16 %v1647_v41  ;;  %v1648_v11 = vunpack.i.l.bf16 %v1647_v41 }
 0x37f   : > { %v1617_v27 = vpop.permute.xlu0 %1616 }
 0x380   : > { %v1619_v28 = vunpack.i.h.bf16 %v1617_v27  ;;  %v1618_v31 = vunpack.i.l.bf16 %v1617_v27  ;;  %v1632_v25 = vpop.permute.xlu1 %1631 }
 0x381   : > { %v1634_v15 = vunpack.i.h.bf16 %v1632_v25  ;;  %v1633_v34 = vunpack.i.l.bf16 %v1632_v25 }
 0x382   : > { %v852_v30 = vsel %vm3002_vm8, %v1618_v31, %v1619_v28  ;;  %v854_v36 = vsel %vm3003_vm9, %v1619_v28, %v1618_v31  ;;  %vm3007_vm8 = vmmov %vm3005_vm0 }
 0x383   : > { %v856_v37 = vmax.f32 %v2543_v57, %v854_v36  ;;  %v857_v38 = vmax.f32 %v2547_v59, %v852_v30  ;;  %v873_v39 = vsel %vm3004_vm4, %v1633_v34, %v1634_v15  ;;  %v875_v40 = vsel %vm3005_vm0, %v1634_v15, %v1633_v34 }
 0x384   : > { %v878_v46 = vmax.f32 %v862_v44, %v875_v40  ;;  %v879_v50 = vmax.f32 %v863_v45, %v873_v39  ;;  %v874_v54 = vsel %vm3007_vm8, %v1629_v9, %v1628_v7  ;;  %v913_v15 = vsel %vm3013_vm10, %v1648_v11, %v1649_v56  ;;  %vm3014_vm8 = vmmov %vm3013_vm10 }
 0x385   : > { %v860_v14 = vsel %vm2079_vm2, %v856_v37, %v2543_v57  ;;  %v861_v52 = vsel %vm2084_vm3, %v857_v38, %v2547_v59  ;;  %vm3008_vm2 = vnez %v2925_v2  ;;  %vm3009_vm3 = vcmp.lt.s32.totalorder %v2065_v33, 127 }
 0x386   : > { %v876_v47 = vmax.f32 %v860_v14, %v874_v54  ;;  %v877_v22 = vmax.f32 %v861_v52, %v872_v49  ;;  %v882_v48 = vsel %vm2107_vm6, %v878_v46, %v862_v44  ;;  %v883_v26 = vsel %vm3008_vm2, %v879_v50, %v863_v45  ;;  %vm3010_vm9 = vmmov %vm3009_vm3 }
 0x387   : > { %v1642_v42 = vpop.permute.xlu0 %1641  ;;  %vm3011_vm4 = vmmov %vm3009_vm3  ;;  %v915_v34 = vsel %vm3014_vm8, %v1649_v56, %v1648_v11  ;;  %v1008_v11 = vld [vmem:[%s2884_s5] sm:$0xff] }
 0x388   : > { %v1644_v12 = vunpack.i.h.bf16 %v1642_v42  ;;  %v1643_v13 = vunpack.i.l.bf16 %v1642_v42  ;;  %v1637_v16 = vpop.permute.xlu1 %1636  ;;  %vm3012_vm0 = vmmov %vm3009_vm3  ;;  %v880_v30 = vsel %vm2107_vm6, %v876_v47, %v860_v14  ;;  %v881_v36 = vsel %vm3008_vm2, %v877_v22, %v861_v52 }
 0x389   : > { %v1639_v19 = vunpack.i.h.bf16 %v1637_v16  ;;  %v1638_v20 = vunpack.i.l.bf16 %v1637_v16  ;;  %vm3019_vm6 = vmmov %vm3014_vm8 }
 0x38a   : > { %v893_v27 = vsel %vm3009_vm3, %v1643_v13, %v1644_v12  ;;  %v895_v28 = vsel %vm3010_vm9, %v1644_v12, %v1643_v13  ;;  %vm3016_vm3 = vnez %v2929_v29  ;;  %vm3017_vm9 = vnez %v2931_v63  ;;  %vm3020_vm2 = vmmov %vm3019_vm6  ;;  %v1011_v63 = vld [vmem:[%s2884_s5 + $0x18] sm:$0xff] }
 0x38b   : > { %v898_v31 = vmax.f32 %v882_v48, %v893_v27  ;;  %v899_v25 = vmax.f32 %v883_v26, %v895_v28  ;;  %v892_v32 = vsel %vm3011_vm4, %v1638_v20, %v1639_v19  ;;  %v894_v62 = vsel %vm3012_vm0, %v1639_v19, %v1638_v20 }
 0x38c   : > { %v896_v39 = vmax.f32 %v880_v30, %v892_v32  ;;  %v897_v40 = vmax.f32 %v881_v36, %v894_v62  ;;  %vm3018_vm4 = vnez %v2933_v4 }
 0x38d   : > { %v902_v9 = vsel %vm3015_vm14, %v898_v31, %v882_v48  ;;  %v903_v7 = vsel %vm3016_vm3, %v899_v25, %v883_v26 }
 0x38e   : > { %v918_v37 = vmax.f32 %v902_v9, %v913_v15  ;;  %v919_v38 = vmax.f32 %v903_v7, %v915_v34  ;;  %v900_v1 = vsel %vm3015_vm14, %v896_v39, %v880_v30  ;;  %v901_v2 = vsel %vm3016_vm3, %v897_v40, %v881_v36 }
 0x38f   : > { %v1652_v41 = vpop.permute.xlu0 %1651  ;;  %vm3021_vm14 = vcmp.lt.s32.totalorder %v2065_v33, 16  ;;  %vm3025_vm3 = vcmp.lt.s32.totalorder %v2065_v33, 32 }
 0x390   : > { %v922_v44 = vsel %vm3017_vm9, %v918_v37, %v902_v9  ;;  %v923_v45 = vsel %vm3018_vm4, %v919_v38, %v903_v7  ;;  %v1654_v46 = vunpack.i.h.bf16 %v1652_v41  ;;  %v1653_v50 = vunpack.i.l.bf16 %v1652_v41  ;;  %vm3022_vm0 = vmmov %vm3021_vm14 }
 0x391   : > { %v1670_v49 = vpack.i.bf16 %v923_v45, %v922_v44  ;;  %vm3023_vm10 = vmmov %vm3022_vm0 }
 0x392   : > { %v912_v14 = vsel %vm3019_vm6, %v1653_v50, %v1654_v46  ;;  %v914_v52 = vsel %vm3020_vm2, %v1654_v46, %v1653_v50  ;;  %vm3024_vm8 = vmmov %vm3022_vm0  ;;  %vm3029_vm2 = vcmp.lt.s32.totalorder %v2065_v33, 112 }
 0x393   : > { %v916_v54 = vmax.f32 %v900_v1, %v912_v14  ;;  %v917_v42 = vmax.f32 %v901_v2, %v914_v52  ;;  %1671 = vrot.lane.b32.xlu0 %v1670_v49, %s1852_s20  ;;  %1661 = vrot.lane.b32.xlu1 %v1670_v49, %s1850_s19  ;;  %vm3028_vm6 = vmmov %vm3025_vm3 }
 0x395   : > { %v920_v56 = vsel %vm3017_vm9, %v916_v54, %v900_v1  ;;  %v921_v35 = vsel %vm3018_vm4, %v917_v42, %v901_v2  ;;  %vm3026_vm9 = vmmov %vm3025_vm3 }
 0x396   : > { %v1655_v29 = vpack.i.bf16 %v921_v35, %v920_v56  ;;  %vm3027_vm4 = vmmov %vm3025_vm3 }
 0x398   : > { %1656 = vrot.lane.b32.xlu2 %v1655_v29, %s1850_s19 }
 0x39b   : > { %1676 = vrot.lane.b32.xlu0 %v1655_v29, %s1851_s8  ;;  %1666 = vrot.lane.b32.xlu1 %v1655_v29, %s1852_s20  ;;  %s1789_s20 = sshra.s32 %s1279_s17, 4  ;;  %s1790_s20 = int_to_ptr.hbm [resolvable:$true] %s1789_s20 }
 0x39c   : > { %p1796_p0 = scmp.lt.s32.totalorder %s1790_s20, %s2885_s6 }
 0x3a0   : > { %1681 = vrot.lane.b32.xlu2 %v1670_v49, %s1851_s8  ;;  %s1264_s8 = scalar_lea.sflag [#allocation4], %s1976_s18 }
 0x3a3   : > { %1014 = vperm.xlu0 %1454, %v1008_v11   ;;  %1686 = vrot.lane.b32.xlu1 %v1670_v49, %s1853_s26 }
 0x3a8   : > { %1691 = vrot.lane.b32.xlu2 %v1655_v29, %s1853_s26  ;;  %s1791_s26 = scalar_lea.hbm %s1790_s20, 64 }
 0x3a9   : > { %p1792_p6 = scmp.ne.s32.totalorder %s1790_s20, %s1791_s26  ;;  %p1797_p1 = scmp.lt.s32.totalorder %s1795_s14, %s1791_s26 }
 0x3ab   : > { %1029 = vperm.xlu0 %1454, %v1011_v63   ;;  %p1793_p9 = pnand %p1792_p6, %p1940_p11  ;;  %p1798_p3 = por %p1797_p1, %p1796_p0 }
 0x3ad   : > { %p1794_p13 = pneg %p1793_p9 }
 0x3af   : > { %p1799_p4 = pnand %p1798_p3, %p1794_p13 }
 0x3f2   : > { %v1657_v4 = vpop.permute.xlu2 %1656 }
 0x3f3   : > { %v1659_v13 = vunpack.i.h.bf16 %v1657_v4  ;;  %v1658_v16 = vunpack.i.l.bf16 %v1657_v4 }
 0x3f5   : > { %v932_v31 = vsel %vm3023_vm10, %v1658_v16, %v1659_v13  ;;  %v934_v25 = vsel %vm3024_vm8, %v1659_v13, %v1658_v16 }
 0x3f6   : > { %v936_v9 = vmax.f32 %v920_v56, %v934_v25  ;;  %v937_v7 = vmax.f32 %v921_v35, %v932_v31 }
 0x3f8   : > { %v941_v14 = vsel %vm2272_vm11, %v937_v7, %v921_v35 }
 0x3fa   : > { %v1682_v12 = vpop.permute.xlu2 %1681 }
 0x3fb   : > { %v1684_v41 = vunpack.i.h.bf16 %v1682_v12  ;;  %v1683_v46 = vunpack.i.l.bf16 %v1682_v12 }
 0x3fd   : > { %v973_v55 = vsel %vm3029_vm2, %v1683_v46, %v1684_v41 }
 0x405   : > { %v1672_v19 = vpop.permute.xlu0 %1671  ;;  %v1662_v20 = vpop.permute.xlu1 %1661 }
 0x406   : > { %v1664_v47 = vunpack.i.h.bf16 %v1662_v20  ;;  %v1663_v22 = vunpack.i.l.bf16 %v1662_v20  ;;  %v1674_v48 = vunpack.i.h.bf16 %v1672_v19  ;;  %v1673_v26 = vunpack.i.l.bf16 %v1672_v19 }
 0x408   : > { %v933_v27 = vsel %vm3021_vm14, %v1663_v22, %v1664_v47  ;;  %v935_v28 = vsel %vm3022_vm0, %v1664_v47, %v1663_v22  ;;  %v953_v30 = vsel %vm3025_vm3, %v1673_v26, %v1674_v48  ;;  %v955_v36 = vsel %vm3026_vm9, %v1674_v48, %v1673_v26 }
 0x409   : > { %v938_v32 = vmax.f32 %v922_v44, %v935_v28  ;;  %v939_v62 = vmax.f32 %v923_v45, %v933_v27  ;;  %vm3033_vm0 = vcmp.lt.s32.totalorder %v2065_v33, 96 }
 0x40a   : > { %vm3036_vm10 = vmmov %vm3033_vm0 }
 0x40b   : > { %v942_v15 = vsel %vm2265_vm1, %v938_v32, %v922_v44  ;;  %v943_v34 = vsel %vm2272_vm11, %v939_v62, %v923_v45  ;;  %v1692_v44 = vpop.permute.xlu2 %1691  ;;  %v940_v45 = vsel %vm2265_vm1, %v936_v9, %v920_v56  ;;  %vm3030_vm1 = vmmov %vm3029_vm2 }
 0x40c   : > { %v958_v39 = vmax.f32 %v942_v15, %v955_v36  ;;  %v959_v40 = vmax.f32 %v943_v34, %v953_v30  ;;  %v975_v58 = vsel %vm3030_vm1, %v1684_v41, %v1683_v46  ;;  %v1694_v56 = vunpack.i.h.bf16 %v1692_v44  ;;  %vm3031_vm11 = vmmov %vm3030_vm1 }
 0x40d   : > { %v1677_v37 = vpop.permute.xlu0 %1676  ;;  %v1667_v38 = vpop.permute.xlu1 %1666  ;;  %v1693_v35 = vunpack.i.l.bf16 %v1692_v44  ;;  %vm3032_vm14 = vmmov %vm3030_vm1 }
 0x40e   : > { %v1669_v50 = vunpack.i.h.bf16 %v1667_v38  ;;  %v1668_v49 = vunpack.i.l.bf16 %v1667_v38  ;;  %v1679_v1 = vunpack.i.h.bf16 %v1677_v37  ;;  %v1678_v2 = vunpack.i.l.bf16 %v1677_v37 }
 0x40f   : > { %v962_v11 = vsel %vm2306_vm5, %v958_v39, %v942_v15  ;;  %v963_v63 = vsel %vm2990_vm15, %v959_v40, %v943_v34  ;;  %v992_v31 = vsel %vm3033_vm0, %v1693_v35, %v1694_v56  ;;  %v994_v7 = vsel %vm3036_vm10, %v1694_v56, %v1693_v35 }
 0x410   : > { %v952_v52 = vsel %vm3027_vm4, %v1668_v49, %v1669_v50  ;;  %v954_v54 = vsel %vm3028_vm6, %v1669_v50, %v1668_v49  ;;  %v972_v4 = vsel %vm3031_vm11, %v1678_v2, %v1679_v1  ;;  %v974_v12 = vsel %vm3032_vm14, %v1679_v1, %v1678_v2 }
 0x411   : > { %v956_v42 = vmax.f32 %v940_v45, %v954_v54  ;;  %v957_v29 = vmax.f32 %v941_v14, %v952_v52  ;;  %v978_v19 = vmax.f32 %v962_v11, %v973_v55  ;;  %v979_v20 = vmax.f32 %v963_v63, %v975_v58 }
 0x413   : > { %v960_v13 = vsel %vm2306_vm5, %v956_v42, %v940_v45  ;;  %v961_v16 = vsel %vm2990_vm15, %v957_v29, %v941_v14  ;;  %v982_v8 = vsel %vm2341_vm13, %v978_v19, %v962_v11  ;;  %vm3034_vm5 = vmmov %vm3033_vm0  ;;  %v983_v32 = vsel %vm2349_vm12, %v979_v20, %v963_v63 }
 0x414   : > { %v976_v47 = vmax.f32 %v960_v13, %v972_v4  ;;  %v977_v22 = vmax.f32 %v961_v16, %v974_v12  ;;  %vm3035_vm15 = vmmov %vm3033_vm0 }
 0x415   : > { %v1687_v48 = vpop.permute.xlu1 %1686 }
 0x416   : > { %v1689_v26 = vunpack.i.h.bf16 %v1687_v48  ;;  %v1688_v27 = vunpack.i.l.bf16 %v1687_v48  ;;  %v980_v28 = vsel %vm2341_vm13, %v976_v47, %v960_v13  ;;  %v981_v6 = vsel %vm2349_vm12, %v977_v22, %v961_v16 }
 0x417   : > { %v996_v9 = vmax.f32 %v980_v28, %v992_v31  ;;  %v997_v30 = vmax.f32 %v981_v6, %v994_v7  ;;  %vm3037_vm13 = vnez %v2962_v10  ;;  %vm1032_vm12 = vcmask 523264   ;;  %v1005_v10 = vld [vmem:[%s2883_s4 + $0x8] sm:$0xff] }
 0x418   : > { %v993_v25 = vsel %vm3034_vm5, %v1688_v27, %v1689_v26  ;;  %v995_v62 = vsel %vm3035_vm15, %v1689_v26, %v1688_v27 }
 0x419   : > { %v998_v15 = vmax.f32 %v982_v8, %v993_v25  ;;  %v999_v34 = vmax.f32 %v983_v32, %v995_v62  ;;  %v1000_v53 = vsel %vm2361_vm7, %v996_v9, %v980_v28  ;;  %v1001_v33 = vsel %vm3037_vm13, %v997_v30, %v981_v6 }
 0x41b   : > { %v1002_v51 = vsel %vm2361_vm7, %v998_v15, %v982_v8  ;;  %v1003_v36 = vsel %vm3037_vm13, %v999_v34, %v983_v32 }
 0x41c   : > { %1053 = vmatpush.msrb.mxu0 %v1002_v51  ;;  %1380 = vmatpush.msra.mxu2 %v1002_v51 }
 0x41d   : > { %1082 = vmatpush.msrb.mxu1 %v1003_v36  ;;  %1388 = vmatpush.msra.mxu3 %v1003_v36 }
 0x41e   : > { %1054 = vmatpush.msrb.mxu0 %v1000_v53  ;;  %1381 = vmatpush.msra.mxu2 %v1000_v53 }
 0x41f   : > { %1083 = vmatpush.msrb.mxu1 %v1001_v33  ;;  %1389 = vmatpush.msra.mxu3 %v1001_v33 }
 0x420   : > { %1055 = vmatpush.msrb.mxu0 %v2551_v43  ;;  %1382 = vmatpush.msra.mxu2 %v2551_v43 }
 0x421   : > { %1084 = vmatpush.msrb.mxu1 %v2555_v60  ;;  %1390 = vmatpush.msra.mxu3 %v2555_v60 }
 0x422   : > { %1056 = vmatpush.msrb.mxu0 %v2543_v57  ;;  %1383 = vmatpush.msra.mxu2 %v2543_v57 }
 0x423   : > { %1085 = vmatpush.msrb.mxu1 %v2547_v59  ;;  %1391 = vmatpush.msra.mxu3 %v2547_v59 }
 0x424   : > { %1057 = vmatpush.msrb.mxu0 %v2379_v17  ;;  %1384 = vmatpush.msra.mxu2 %v2379_v17  ;;  %v1015_v17 = vpop.permute.xlu0 %1014 }
 0x425   : > { %1086 = vmatpush.msrb.mxu1 %v2383_v18  ;;  %1392 = vmatpush.msra.mxu3 %v2383_v18 }
 0x426   : > { %1058 = vmatpush.msrb.mxu0 %v2389_v5  ;;  %1385 = vmatpush.msra.mxu2 %v2389_v5 }
 0x427   : > { %1087 = vmatpush.msrb.mxu1 %v2393_v23  ;;  %1393 = vmatpush.msra.mxu3 %v2393_v23 }
 0x428   : > { %1059 = vmatpush.msrb.mxu0 %v2037_v21  ;;  %1386 = vmatpush.msra.mxu2 %v2037_v21  ;;  %v1009_v21 = vld [vmem:[%s2884_s5 + $0x8] sm:$0xff] }
 0x429   : > { %1088 = vmatpush.msrb.mxu1 %v2040_v24  ;;  %1394 = vmatpush.msra.mxu3 %v2040_v24  ;;  %v1010_v24 = vld [vmem:[%s2884_s5 + $0x10] sm:$0xff] }
 0x42a   : > { %1060 = vmatpush.msrb.mxu0 %v2026_v0  ;;  %1387 = vmatpush.msra.mxu2 %v2026_v0  ;;  %v1006_v0 = vld [vmem:[%s2883_s4 + $0x10] sm:$0xff] }
 0x42b   : > { %1089 = vmatpush.msrb.mxu1 %v2029_v3  ;;  %1395 = vmatpush.msra.mxu3 %v2029_v3  ;;  %v1007_v3 = vld [vmem:[%s2883_s4 + $0x18] sm:$0xff] }
 0x42c   : > { %1365 = vmatmul.msk.f32.vlgmr.msrb.gmra.mxu0 %vm1032_vm12, %v1004_v61  ;;  %1366 = vmatmul.msk.f32.vlgmr.msra.gmra.mxu2 %vm1032_vm12, %v1005_v10  ;;  %v1030_v25 = vpop.permute.xlu0 %1029 }
 0x42d   : > { %1369 = vmatmul.msk.f32.vlgmr.msrb.gmra.mxu1 %vm1032_vm12, %v1004_v61  ;;  %1370 = vmatmul.msk.f32.vlgmr.msra.gmra.mxu3 %vm1032_vm12, %v1005_v10 }
 0x42e   : > { %1019 = vperm.xlu1 %1695, %v1009_v21   ;;  %1024 = vperm.xlu2 %1696, %v1010_v24  }
 0x434   : > { %1367 = vmatmul.msk.f32.gmra.mxu2 %vm1032_vm12, %v1006_v0 }
 0x435   : > { %1371 = vmatmul.msk.f32.gmra.mxu3 %vm1032_vm12, %v1006_v0 }
 0x43c   : > { %1368 = vmatmul.msk.f32.gmra.mxu2 %vm1032_vm12, %v1007_v3 }
 0x43d   : > { %1372 = vmatmul.msk.f32.gmra.mxu3 %vm1032_vm12, %v1007_v3 }
 0x488   : > { %v1025_v2 = vpop.permute.xlu2 %1024 }
 0x4a0   : > { %v1020_v60 = vpop.permute.xlu1 %1019 }
 0x4a9   : > { %v1062_v18 = vpop.f32.mrf.mxu0 }
 0x4aa   : > { %v2769_v5 = vadd.f32 %v1062_v18, %v1015_v17  ;;  %v1091_v23 = vpop.f32.mrf.mxu1 }
 0x4ab   : > { %v2771_v57 = vadd.f32 %v1091_v23, %v1015_v17 }
 0x4ac   : > { %v1103_v59 = vsub.f32 0.0, %v2769_v5 }
 0x4ad   : > { %v1104_v43 = vsub.f32 0.0, %v2771_v57 }
 0x4ae   : > { %v1111_v37 = vmul.f32 1.442695, %v1103_v59 }
 0x4af   : > { %v1113_v38 = vmul.f32 1.442695, %v1104_v43  ;;  %v1065_v39 = vpop.f32.mrf.mxu2 }
 0x4b0   : > { %1713 = vpow2.f32 %v1111_v37  ;;  %v2775_v40 = vadd.f32 %v1065_v39, %v1020_v60  ;;  %v1094_v41 = vpop.f32.mrf.mxu3 }
 0x4b1   : > { %1715 = vpow2.f32 %v1113_v38  ;;  %v2777_v46 = vadd.f32 %v1094_v41, %v1020_v60 }
 0x4b2   : > { %v1105_v50 = vsub.f32 0.0, %v2775_v40 }
 0x4b3   : > { %v1106_v49 = vsub.f32 0.0, %v2777_v46 }
 0x4b4   : > { %v1115_v44 = vmul.f32 1.442695, %v1105_v50 }
 0x4b5   : > { %v1117_v1 = vmul.f32 1.442695, %v1106_v49 }
 0x4b6   : > { %v1714_v45 = vpop.eup %1713  ;;  %1717 = vpow2.f32 %v1115_v44 }
 0x4b7   : > { %v1716_v14 = vpop.eup %1715  ;;  %v1127_v52 = vadd.f32 1.0, %v1714_v45  ;;  %1719 = vpow2.f32 %v1117_v1  ;;  %v1068_v54 = vpop.f32.mrf.mxu2 }
 0x4b8   : > { %v1128_v42 = vadd.f32 1.0, %v1716_v14  ;;  %v2781_v29 = vadd.f32 %v1068_v54, %v1025_v2  ;;  %v1097_v11 = vpop.f32.mrf.mxu3 }
 0x4b9   : > { %1721 = vrcp.f32 %v1127_v52  ;;  %v2784_v55 = vadd.f32 %v1097_v11, %v1025_v2  ;;  %v1144_v35 = vand.u32 2147483647, %v1127_v52  ;;  %v1146_v4 = vand.u32 2147483648, %v1127_v52 }
 0x4ba   : > { %1723 = vrcp.f32 %v1128_v42  ;;  %v1107_v63 = vsub.f32 0.0, %v2781_v29  ;;  %v1159_v13 = vand.u32 2147483647, %v1128_v42  ;;  %v1161_v16 = vand.u32 2147483648, %v1128_v42 }
 0x4bb   : > { %v1108_v22 = vsub.f32 0.0, %v2784_v55  ;;  %vm1140_vm7 = vweird.f32 %v1127_v52  ;;  %vm2793_vm8 = vcmp.eq.f32.partialorder %v1144_v35, 8.507059e+37  ;;  %v1147_v6 = vor.u32 1.1754944e-38, %v1146_v4 }
 0x4bc   : > { %v1718_v58 = vpop.eup %1717  ;;  %v1119_v20 = vmul.f32 1.442695, %v1107_v63  ;;  %vm1155_vm3 = vweird.f32 %v1128_v42  ;;  %vm2797_vm9 = vcmp.eq.f32.partialorder %v1159_v13, 8.507059e+37  ;;  %v1162_v15 = vor.u32 1.1754944e-38, %v1161_v16 }
 0x4bd   : > { %v1720_v56 = vpop.eup %1719  ;;  %v2786_v12 = vadd.f32 1.0, %v1718_v58  ;;  %v1121_v9 = vmul.f32 1.442695, %v1108_v22 }
 0x4be   : > { %v2788_v19 = vadd.f32 1.0, %v1720_v56 }
 0x4bf   : > { %v1722_v47 = vpop.eup %1721  ;;  %1725 = vrcp.f32 %v2786_v12  ;;  %v1071_v27 = vpop.f32.mrf.mxu2  ;;  %v1174_v36 = vand.u32 2147483647, %v2786_v12  ;;  %v1176_v3 = vand.u32 2147483648, %v2786_v12  ;;  %vm1170_vm0 = vweird.f32 %v2786_v12 }
 0x4c0   : > { %v1724_v48 = vpop.eup %1723  ;;  %v1136_v26 = vmul.f32 %v1722_v47, %v1127_v52  ;;  %1727 = vrcp.f32 %v2788_v19  ;;  %v1100_v28 = vpop.f32.mrf.mxu3  ;;  %v2801_v7 = vadd.f32 %v1071_v27, %v1030_v25  ;;  %vm1141_vm4 = vweird.f32 %v1722_v47 }
 0x4c1   : > { %v1151_v8 = vmul.f32 %v1724_v48, %v1128_v42  ;;  %1729 = vpow2.f32 %v1119_v20  ;;  %v2803_v30 = vadd.f32 %v1100_v28, %v1030_v25  ;;  %vm1156_vm6 = vweird.f32 %v1724_v48  ;;  %vm1142_vm2 = vmor %vm1140_vm7, %vm1141_vm4 }
 0x4c2   : > { %v1137_v32 = vsub.f32 1.0, %v1136_v26  ;;  %1731 = vpow2.f32 %v1121_v9  ;;  %v1109_v61 = vsub.f32 0.0, %v2801_v7  ;;  %v1189_v17 = vand.u32 2147483647, %v2788_v19  ;;  %vm1157_vm1 = vmor %vm1155_vm3, %vm1156_vm6 }
 0x4c3   : > { %v1152_v34 = vsub.f32 1.0, %v1151_v8  ;;  %v1110_v10 = vsub.f32 0.0, %v2803_v30  ;;  %v1191_v59 = vand.u32 2147483648, %v2788_v19  ;;  %v1177_v11 = vor.u32 1.1754944e-38, %v1176_v3 }
 0x4c4   : > { %v1138_v51 = vmul.f32 %v1722_v47, %v1137_v32  ;;  %v1123_v43 = vmul.f32 1.442695, %v1109_v61  ;;  %vm1185_vm15 = vweird.f32 %v2788_v19  ;;  %vm1175_vm10 = vcmp.eq.f32.partialorder %v1174_v36, 8.507059e+37 }
 0x4c5   : > { %v1726_v53 = vpop.eup %1725  ;;  %v1153_v33 = vmul.f32 %v1724_v48, %v1152_v34  ;;  %v1125_v39 = vmul.f32 1.442695, %v1110_v10  ;;  %v1192_v58 = vor.u32 1.1754944e-38, %v1191_v59  ;;  %vm1190_vm12 = vcmp.eq.f32.partialorder %v1189_v17, 8.507059e+37 }
 0x4c6   : > { %v1728_v21 = vpop.eup %1727  ;;  %v1139_v24 = vadd.f32 %v1722_v47, %v1138_v51  ;;  %v1166_v0 = vmul.f32 %v1726_v53, %v2786_v12  ;;  %vm1171_vm11 = vweird.f32 %v1726_v53  ;;  %1733 = vpow2.f32 %v1123_v43 }
 0x4c7   : > { %v1154_v18 = vadd.f32 %v1724_v48, %v1153_v33  ;;  %v1181_v23 = vmul.f32 %v1728_v21, %v2788_v19  ;;  %v1730_v60 = vpop.eup %1729  ;;  %vm1186_vm14 = vweird.f32 %v1728_v21  ;;  %vm1172_vm5 = vmor %vm1170_vm0, %vm1171_vm11 }
 0x4c8   : > { %v1143_v37 = vsel %vm1142_vm2, %v1722_v47, %v1139_v24  ;;  %v1167_v38 = vsub.f32 1.0, %v1166_v0  ;;  %v1131_v44 = vadd.f32 1.0, %v1730_v60  ;;  %v1732_v14 = vpop.eup %1731  ;;  %vm1187_vm13 = vmor %vm1185_vm15, %vm1186_vm14 }
 0x4c9   : > { %v1148_v41 = vsel %vm2793_vm8, %v1147_v6, %v1143_v37  ;;  %v1158_v50 = vsel %vm1157_vm1, %v1724_v48, %v1154_v18  ;;  %v1182_v49 = vsub.f32 1.0, %v1181_v23 }
 0x4ca   : > { %v1149_v1 = vmul.f32 %v1148_v41, %v2769_v5  ;;  %v1163_v2 = vsel %vm2797_vm9, %v1162_v15, %v1158_v50  ;;  %v1168_v45 = vmul.f32 %v1726_v53, %v1167_v38  ;;  %1735 = vrcp.f32 %v1131_v44 }
 0x4cb   : > { %v1164_v52 = vmul.f32 %v1163_v2, %v2771_v57  ;;  %v1183_v54 = vmul.f32 %v1728_v21, %v1182_v49  ;;  %v1132_v5 = vadd.f32 1.0, %v1732_v14  ;;  %1737 = vpow2.f32 %v1125_v39 }
 0x4cc   : > { %1255 = vst [vmem:[%s2824_s11] sm:$0xff] %v1149_v1  ;;  %v1169_v42 = vadd.f32 %v1726_v53, %v1168_v45  ;;  %v1734_v4 = vpop.eup %1733  ;;  %v1206_v28 = vand.u32 2147483648, %v1131_v44  ;;  %v1204_v8 = vand.u32 2147483647, %v1131_v44  ;;  %vm1200_vm8 = vweird.f32 %v1131_v44 }
 0x4cd   : > { %1256 = vst [vmem:[%s2824_s11 + $0x8] sm:$0xff] %v1164_v52  ;;  %v1184_v63 = vadd.f32 %v1728_v21, %v1183_v54  ;;  %1739 = vrcp.f32 %v1132_v5  ;;  %v1133_v19 = vadd.f32 1.0, %v1734_v4  ;;  %v1221_v32 = vand.u32 2147483648, %v1132_v5 }
 0x4ce   : > { %v1173_v57 = vsel %vm1172_vm5, %v1726_v53, %v1169_v42  ;;  %v1207_v62 = vor.u32 1.1754944e-38, %v1206_v28  ;;  %v1219_v34 = vand.u32 2147483647, %v1132_v5  ;;  %vm1205_vm4 = vcmp.eq.f32.partialorder %v1204_v8, 8.507059e+37 }
 0x4cf   : > { %v1178_v56 = vsel %vm1175_vm10, %v1177_v11, %v1173_v57  ;;  %v1188_v35 = vsel %vm1187_vm13, %v1728_v21, %v1184_v63  ;;  %1741 = vrcp.f32 %v1133_v19  ;;  %vm1215_vm6 = vweird.f32 %v1132_v5 }
 0x4d0   : > { %v1179_v12 = vmul.f32 %v1178_v56, %v2775_v40  ;;  %v1193_v13 = vsel %vm1190_vm12, %v1192_v58, %v1188_v35  ;;  %v1736_v16 = vpop.eup %1735  ;;  %v1222_v10 = vor.u32 1.1754944e-38, %v1221_v32  ;;  %vm1220_vm1 = vcmp.eq.f32.partialorder %v1219_v34, 8.507059e+37 }
 0x4d1   : > { %v1194_v20 = vmul.f32 %v1193_v13, %v2777_v46  ;;  %v1196_v47 = vmul.f32 %v1736_v16, %v1131_v44  ;;  %v1738_v22 = vpop.eup %1737  ;;  %vm1201_vm7 = vweird.f32 %v1736_v16  ;;  %v1236_v0 = vand.u32 2147483648, %v1133_v19 }
 0x4d2   : > { %1257 = vst [vmem:[%s2824_s11 + $0x10] sm:$0xff] %v1179_v12  ;;  %v1134_v27 = vadd.f32 1.0, %v1738_v22  ;;  %vm1202_vm3 = vmor %vm1200_vm8, %vm1201_vm7  ;;  %v1234_v23 = vand.u32 2147483647, %v1133_v19  ;;  %vm1230_vm14 = vweird.f32 %v1133_v19 }
 0x4d3   : > { %1258 = vst [vmem:[%s2824_s11 + $0x18] sm:$0xff] %v1194_v20  ;;  %v1740_v48 = vpop.eup %1739  ;;  %v1197_v26 = vsub.f32 1.0, %v1196_v47  ;;  %v1237_v37 = vor.u32 1.1754944e-38, %v1236_v0 }
 0x4d4   : > { %v1211_v31 = vmul.f32 %v1740_v48, %v1132_v5  ;;  %1743 = vrcp.f32 %v1134_v27  ;;  %vm1216_vm9 = vweird.f32 %v1740_v48  ;;  %v1249_v39 = vand.u32 2147483647, %v1134_v27 }
 0x4d5   : > { %v1198_v6 = vmul.f32 %v1736_v16, %v1197_v26  ;;  %v1742_v46 = vpop.eup %1741  ;;  %vm1217_vm2 = vmor %vm1215_vm6, %vm1216_vm9  ;;  %vm1235_vm15 = vcmp.eq.f32.partialorder %v1234_v23, 8.507059e+37  ;;  %vm1245_vm10 = vweird.f32 %v1134_v27 }
 0x4d6   : > { %v1212_v40 = vsub.f32 1.0, %v1211_v31  ;;  %v1226_v51 = vmul.f32 %v1742_v46, %v1133_v19  ;;  %vm1231_vm11 = vweird.f32 %v1742_v46  ;;  %vm1250_vm12 = vcmp.eq.f32.partialorder %v1249_v39, 8.507059e+37 }
 0x4d7   : > { %v1199_v25 = vadd.f32 %v1736_v16, %v1198_v6  ;;  %vm1232_vm0 = vmor %vm1230_vm14, %vm1231_vm11 }
 0x4d8   : > { %v1213_v15 = vmul.f32 %v1740_v48, %v1212_v40  ;;  %v1227_v21 = vsub.f32 1.0, %v1226_v51 }
 0x4d9   : > { %v1203_v9 = vsel %vm1202_vm3, %v1736_v16, %v1199_v25 }
 0x4da   : > { %v1208_v36 = vsel %vm1205_vm4, %v1207_v62, %v1203_v9  ;;  %v1214_v53 = vadd.f32 %v1740_v48, %v1213_v15  ;;  %v1744_v33 = vpop.eup %1743  ;;  %v1228_v18 = vmul.f32 %v1742_v46, %v1227_v21 }
 0x4db   : > { %v1209_v61 = vmul.f32 %v1208_v36, %v2781_v29  ;;  %v1241_v3 = vmul.f32 %v1744_v33, %v1134_v27  ;;  %v1251_v29 = vand.u32 2147483648, %v1134_v27  ;;  %vm1246_vm5 = vweird.f32 %v1744_v33 }
 0x4dc   : > { %v1218_v24 = vsel %vm1217_vm2, %v1740_v48, %v1214_v53  ;;  %v1229_v60 = vadd.f32 %v1742_v46, %v1228_v18  ;;  %vm1247_vm13 = vmor %vm1245_vm10, %vm1246_vm5 }
 0x4dd   : > { %1259 = vst [vmem:[%s2824_s11 + $0x20] sm:$0xff] %v1209_v61  ;;  %v1223_v17 = vsel %vm1220_vm1, %v1222_v10, %v1218_v24  ;;  %v1242_v43 = vsub.f32 1.0, %v1241_v3  ;;  %v1252_v44 = vor.u32 1.1754944e-38, %v1251_v29 }
 0x4de   : > { %v1224_v59 = vmul.f32 %v1223_v17, %v2784_v55  ;;  %v1233_v41 = vsel %vm1232_vm0, %v1742_v46, %v1229_v60 }
 0x4df   : > { %v1243_v38 = vmul.f32 %v1744_v33, %v1242_v43  ;;  %v1238_v55 = vsel %vm1235_vm15, %v1237_v37, %v1233_v41 }
 0x4e0   : > { %1260 = vst [vmem:[%s2824_s11 + $0x28] sm:$0xff] %v1224_v59  ;;  %v1239_v49 = vmul.f32 %v1238_v55, %v2801_v7 }
 0x4e1   : > { %v1244_v50 = vadd.f32 %v1744_v33, %v1243_v38 }
 0x4e2   : > { %1261 = vst [vmem:[%s2824_s11 + $0x30] sm:$0xff] %v1239_v49 }
 0x4e3   : > { %v1248_v1 = vsel %vm1247_vm13, %v1744_v33, %v1244_v50 }
 0x4e4   : > { %v1253_v2 = vsel %vm1250_vm12, %v1252_v44, %v1248_v1 }
 0x4e5   : > { %v1254_v45 = vmul.f32 %v1253_v2, %v2803_v30 }
 0x4e7   : > { %1262 = vst [vmem:[%s2824_s11 + $0x38] sm:$0xff] %v1254_v45 }
 0x4e8   : > { %1802 = shalt.err (!%p1799_p4)
}
 0x4e9   : > { %s1854_s18 = smov 256  }
 0x4ea   : > { %1398 = dma.vmem_to_hbm [thread:$0]  (%p1940_p11), %s1277_s25, 1024, %s1279_s17, %s1264_s8, %s1854_s18, %s1854_s18, %s1850_s19  }
 0x4eb PF: > { %s1293_s11 = sand.u32 1, %s1829_s21   ;;  %p3042_p7 = scmp.ge.s32.totalorder %s1841_s24, 2 }
 0x4ec   : > { %s1294_s16 = scalar_lea.sflag [#allocation4], %s1293_s11 }
 0x4ed   : > { %p1405_p5 = pnand %p3042_p7, %p1944_p12 }
 0x4ef   : > { %p1406_p8 = pneg %p1405_p5 }
 0x4f1   : > { %1824 = dma.done.wait (%p1406_p8), %s1294_s16, 1024  }
 0x4f2   : > { %1826 = vsyncadd (%p1406_p8), %s1294_s16, 4294966272  ;;  %p19_p10 = scmp.ge.s32.totalorder %s1915_s27, 4   ;;  %s3043_s21 = smov %s1833_s22 }
 0x4f3   : > { %s3044_s22 = smov %s1837_s23  ;;  %s3045_s23 = smov %s1927_s30 }
 0x4f4   : > { %s3046_s24 = smov %s1915_s27  ;;  %21 = sbr.rel (!%p19_p10) target bundleno = 5 (0x5), region = 89 }
 0x4f9   :  { %1300 = vsyncpa [#allocation3], 1 }
 0x4fa   :  { %1302 = vsyncpa [#allocation3 + $0x1], 1 }
 0x4fb   :  { %1303 = vsyncpa [#allocation4], 1 }
 0x4fc   :  { %1305 = vsyncpa [#allocation4 + $0x1], 1 }

</bundles_post_ra>
